<compile_context>
chip_gen: v5e
topology: v5e:2x2
jax: 0.10.0
libtpu: 0.0.40
codegen_flags: <defaults>
</compile_context>

<pallas_src>
import jax
import jax.numpy as jnp
from jax import lax
from jax.experimental import pallas as pl
from jax.experimental.pallas import tpu as pltpu


def _round_up(x, m):
    return -(-x // m) * m


# ----------------------------------------------------------------------------- #
# Pallas kernels
# ----------------------------------------------------------------------------- #
def _conv_relu_pool_kernel(a_ref, w_ref, b_ref, o_ref):
    """Fused conv-as-matmul + bias + ReLU + 2x2 max-pool.

    a_ref: (4, TM, K) im2col rows, one leading slot per pool-window tap (phase).
    w_ref: (K, N)     conv weight, column order (ci, ky, kx).
    b_ref: (1, N)     bias.
    o_ref: (TM, N)    pooled activation tile: relu(max_phase(a @ w) + b).
    (ReLU is monotone, bias is shared, so pooling commutes with bias+ReLU.)
    """
    w = w_ref[...]
    z = jnp.dot(a_ref[0], w, preferred_element_type=jnp.float32)
    for p in range(1, 4):
        z = jnp.maximum(z, jnp.dot(a_ref[p], w, preferred_element_type=jnp.float32))
    o_ref[...] = jnp.maximum(z + b_ref[...], 0.0).astype(o_ref.dtype)


def _matmul_bias_kernel(x_ref, w_ref, b_ref, o_ref):
    """o = x @ w + b (N pre-padded to 128 -> lane-dense stores)."""
    o_ref[...] = (
        jnp.dot(x_ref[...], w_ref[...], preferred_element_type=jnp.float32) + b_ref[...]
    ).astype(o_ref.dtype)


_COMPILER_PARAMS = pltpu.CompilerParams(
    dimension_semantics=("parallel",),      # shard the row-tile grid across TCs (2 on v7x)
    vmem_limit_bytes=32 * 1024 * 1024,      # explicit; blocks below are only a few MiB
)


# ----------------------------------------------------------------------------- #
# Kernel wrappers
# ----------------------------------------------------------------------------- #
def conv_relu_pool(a_phases, w, b, *, tile=512):
    """a_phases: (4, M, K); w: (K, N); b: (N,). Returns (M, N) f32 pooled activations."""
    _, M, K = a_phases.shape
    N = w.shape[1]
    tm = tile if M >= tile else _round_up(M, 8)
    Mp = _round_up(M, tm)
    if Mp != M:
        a_phases = jnp.pad(a_phases, ((0, 0), (0, Mp - M), (0, 0)))
    cost = pl.CostEstimate(
        flops=2 * 4 * Mp * K * N + 5 * Mp * N,
        transcendentals=0,
        bytes_accessed=4 * (4 * Mp * K + K * N + N + Mp * N),
    )
    out = pl.pallas_call(
        _conv_relu_pool_kernel,
        out_shape=jax.ShapeDtypeStruct((Mp, N), jnp.float32),
        grid=(Mp // tm,),
        in_specs=[
            pl.BlockSpec((4, tm, K), lambda i: (0, i, 0)),
            pl.BlockSpec((K, N), lambda i: (0, 0)),
            pl.BlockSpec((1, N), lambda i: (0, 0)),
        ],
        out_specs=pl.BlockSpec((tm, N), lambda i: (i, 0)),
        compiler_params=_COMPILER_PARAMS,
        cost_estimate=cost,
    )(a_phases.astype(jnp.float32), w.astype(jnp.float32),
      b.reshape(1, N).astype(jnp.float32))
    return out[:M]


def linear(x, w_padded, b_padded, *, tile=256):
    """x: (B, K); w_padded: (K, NP=128k); b_padded: (1, NP). Returns (B, NP) f32."""
    B, K = x.shape
    NP = w_padded.shape[1]
    tb = tile if B >= tile else _round_up(B, 8)
    Bp = _round_up(B, tb)
    if Bp != B:
        x = jnp.pad(x, ((0, Bp - B), (0, 0)))
    cost = pl.CostEstimate(
        flops=2 * Bp * K * NP,
        transcendentals=0,
        bytes_accessed=4 * (Bp * K + K * NP + NP + Bp * NP),
    )
    out = pl.pallas_call(
        _matmul_bias_kernel,
        out_shape=jax.ShapeDtypeStruct((Bp, NP), jnp.float32),
        grid=(Bp // tb,),
        in_specs=[
            pl.BlockSpec((tb, K), lambda i: (i, 0)),
            pl.BlockSpec((K, NP), lambda i: (0, 0)),
            pl.BlockSpec((1, NP), lambda i: (0, 0)),
        ],
        out_specs=pl.BlockSpec((tb, NP), lambda i: (i, 0)),
        compiler_params=_COMPILER_PARAMS,
        cost_estimate=cost,
    )(x.astype(jnp.float32), w_padded.astype(jnp.float32), b_padded.astype(jnp.float32))
    return out[:B]


# ----------------------------------------------------------------------------- #
# Host glue: pool-phase-grouped im2col (data movement only)
# ----------------------------------------------------------------------------- #
def _im2col_pool_phases_3x3(x_nhwc):
    """3x3/pad-1 im2col rows grouped by 2x2 max-pool phase.

    Returns (4, B*Ho*Wo, C*9): row (b, yo, xo) of phase (dy, dx) is the flattened patch at
    conv-output position (2*yo+dy, 2*xo+dx); column order (ci, ky, kx) matches the PyTorch
    Conv2d weight reshape (co, ci*kh*kw).
    """
    B, H, W, C = x_nhwc.shape
    Ho, Wo = H // 2, W // 2
    xp = jnp.pad(x_nhwc, ((0, 0), (1, 1), (1, 1), (0, 0)))
    phases = []
    for dy in range(2):
        for dx in range(2):
            taps = [
                xp[:, dy + ky: dy + ky + 2 * Ho: 2, dx + kx: dx + kx + 2 * Wo: 2, :]
                for ky in range(3) for kx in range(3)
            ]                                             # each (B, Ho, Wo, C)
            cols = jnp.stack(taps, axis=3)                # (B, Ho, Wo, 9, C); 9-axis = (ky, kx)
            cols = jnp.transpose(cols, (0, 1, 2, 4, 3))   # -> (B, Ho, Wo, C, 9) = (ci, ky, kx)
            phases.append(cols.reshape(B * Ho * Wo, C * 9))
    return jnp.stack(phases, axis=0)


# ----------------------------------------------------------------------------- #
# Model: parameters + forward
# ----------------------------------------------------------------------------- #
def init_params(key, in_channels=1, num_classes=10):
    k1, k2, k3, k4, k5, k6 = jax.random.split(key, 6)
    # PyTorch shapes: conv1.weight (8, in, 3, 3), conv2.weight (16, 8, 3, 3),
    # fc1.weight (10, 16*7*7). Deterministic synthetic init (kaiming-ish scale).
    w1 = jax.random.normal(k1, (8, in_channels, 3, 3), jnp.float32) * (1.0 / (in_channels * 9) ** 0.5)
    b1 = jax.random.normal(k2, (8,), jnp.float32) * 0.01
    w2 = jax.random.normal(k3, (16, 8, 3, 3), jnp.float32) * (1.0 / (8 * 9) ** 0.5)
    b2 = jax.random.normal(k4, (16,), jnp.float32) * 0.01
    wfc = jax.random.normal(k5, (num_classes, 16 * 7 * 7), jnp.float32) * (1.0 / (16 * 49) ** 0.5)
    bfc = jax.random.normal(k6, (num_classes,), jnp.float32) * 0.01
    return dict(w1=w1, b1=b1, w2=w2, b2=b2, wfc=wfc, bfc=bfc)


def _prepare_weights(params):
    """Static layout prep: matmul-ready conv weights; fc columns permuted from PyTorch's
    NCHW flatten order (c,h,w) to our NHWC flatten order (h,w,c) and N padded to 128."""
    c1 = params["w1"].shape[0]
    c2 = params["w2"].shape[0]
    w1m = params["w1"].reshape(c1, -1).T                                      # (Cin*9, 8)
    w2m = params["w2"].reshape(c2, -1).T                                      # (C1*9, 16)
    wfc = params["wfc"]                                                       # (10, C2*7*7), (c,h,w)
    n = wfc.shape[0]
    wfc_hwc = wfc.reshape(n, c2, 7, 7).transpose(0, 2, 3, 1).reshape(n, -1)   # (10, 784), (h,w,c)
    npad = _round_up(n, 128)                                                  # lane-dense output
    wfc_m = jnp.zeros((wfc_hwc.shape[1], npad), jnp.float32).at[:, :n].set(wfc_hwc.T)
    bfc_m = jnp.zeros((1, npad), jnp.float32).at[0, :n].set(params["bfc"])
    return w1m, w2m, wfc_m, bfc_m


@jax.jit
def cnn_forward(params, x_nchw):
    B = x_nchw.shape[0]
    c1 = params["w1"].shape[0]
    c2 = params["w2"].shape[0]
    ncls = params["wfc"].shape[0]
    w1m, w2m, wfc_m, bfc_m = _prepare_weights(params)

    x = jnp.transpose(x_nchw, (0, 2, 3, 1)).astype(jnp.float32)   # NCHW -> NHWC
    H, W = x.shape[1], x.shape[2]

    # stage 1: conv1 + bias + ReLU + 2x2 maxpool (one fused kernel)
    a1 = _im2col_pool_phases_3x3(x)                               # (4, B*14*14, Cin*9)
    p1 = conv_relu_pool(a1, w1m, params["b1"])                    # (B*14*14, 8)
    p1 = p1.reshape(B, H // 2, W // 2, c1)                        # NHWC

    # stage 2: conv2 + bias + ReLU + 2x2 maxpool (one fused kernel)
    a2 = _im2col_pool_phases_3x3(p1)                              # (4, B*7*7, 72)
    p2 = conv_relu_pool(a2, w2m, params["b2"])                    # (B*7*7, 16)

    # fc: rows are already in (h, w, c) flatten order; wfc columns were permuted to match,
    # so no per-forward transpose is needed. Output is lane-dense (128) and sliced to 10.
    flat = p2.reshape(B, (H // 4) * (W // 4) * c2)                # (B, 784)
    logits = linear(flat, wfc_m, bfc_m)                           # (B, 128)
    return logits[:, :ncls]


# ----------------------------------------------------------------------------- #
# Pure-JAX reference (mirrors the PyTorch module) for a correctness self-check.
# ----------------------------------------------------------------------------- #
def _reference_forward(params, x_nchw):
    dn = ("NCHW", "OIHW", "NCHW")
    h = lax.conv_general_dilated(x_nchw, params["w1"], (1, 1), ((1, 1), (1, 1)),
                                 dimension_numbers=dn)
    h = jax.nn.relu(h + params["b1"][None, :, None, None])
    h = lax.reduce_window(h, -jnp.inf, lax.max, (1, 1, 2, 2), (1, 1, 2, 2), "VALID")
    h = lax.conv_general_dilated(h, params["w2"], (1, 1), ((1, 1), (1, 1)),
                                 dimension_numbers=dn)
    h = jax.nn.relu(h + params["b2"][None, :, None, None])
    h = lax.reduce_window(h, -jnp.inf, lax.max, (1, 1, 2, 2), (1, 1, 2, 2), "VALID")
    flat = h.reshape(h.shape[0], -1)                              # NCHW flatten, like PyTorch
    return flat @ params["wfc"].T + params["bfc"]


if __name__ == "__main__":
    key = jax.random.PRNGKey(0)
    pkey, xkey = jax.random.split(key)
    params = init_params(pkey, in_channels=1, num_classes=10)

    # fc1 expects 16*7*7 features -> input spatial must be 28x28 (MNIST-like).
    x = jax.random.normal(xkey, (2, 1, 28, 28), jnp.float32)

    out = jax.block_until_ready(cnn_forward(params, x))
    assert out.shape == (2, 10) and out.dtype == jnp.float32

    ref = _reference_forward(params, x)
    err = float(jnp.max(jnp.abs(out - ref)))
    assert err < 1e-3, f"numerical mismatch vs reference: {err}"

    print("KERNEL_OK")
</pallas_src>

<mosaic_0001>
module attributes {stable_mosaic.version = 11 : i64} {
  func.func @_conv_relu_pool_kernel(%arg0: i32, %arg1: memref<4x392x9xf32, #tpu.memory_space<vmem>>, %arg2: memref<9x8xf32, #tpu.memory_space<vmem>>, %arg3: memref<1x8xf32, #tpu.memory_space<vmem>>, %arg4: memref<392x8xf32, #tpu.memory_space<vmem>>) attributes {dimension_semantics = [#tpu.dimension_semantics<parallel>], iteration_bounds = array<i64: 1>, scalar_prefetch = 0 : i64, scratch_operands = 0 : i64, tpu.core_type = #tpu.core_type<tc>, window_params = [{transform_indices = @transform_0, window_bounds = array<i64: 4, 392, 9>}, {pipeline_mode = #tpu.pipeline_mode<synchronous>, transform_indices = @transform_1, window_bounds = array<i64: 9, 8>}, {pipeline_mode = #tpu.pipeline_mode<synchronous>, transform_indices = @transform_2, window_bounds = array<i64: 1, 8>}, {transform_indices = @transform_3, window_bounds = array<i64: 392, 8>}]} {
    %c0 = arith.constant 0 : index
    %c0_0 = arith.constant 0 : index
    %0 = vector.load %arg2[%c0, %c0_0] : memref<9x8xf32, #tpu.memory_space<vmem>>, vector<9x8xf32>
    %c0_1 = arith.constant 0 : index
    %c0_2 = arith.constant 0 : index
    %c0_3 = arith.constant 0 : index
    %1 = vector.load %arg1[%c0_1, %c0_2, %c0_3] : memref<4x392x9xf32, #tpu.memory_space<vmem>>, vector<1x392x9xf32>
    %2 = vector.shape_cast %1 : vector<1x392x9xf32> to vector<392x9xf32>
    %cst = arith.constant dense<0.000000e+00> : vector<392x8xf32>
    %3 = tpu.matmul %2, %0, %cst {dimension_numbers = #tpu.dot_dimension_numbers<[1], [0], [0], [1], [0, 0, 1, 1], [], []>} : vector<392x9xf32>, vector<9x8xf32>, vector<392x8xf32> -> vector<392x8xf32>
    %c1 = arith.constant 1 : index
    %c0_4 = arith.constant 0 : index
    %c0_5 = arith.constant 0 : index
    %4 = vector.load %arg1[%c1, %c0_4, %c0_5] : memref<4x392x9xf32, #tpu.memory_space<vmem>>, vector<1x392x9xf32>
    %5 = vector.shape_cast %4 : vector<1x392x9xf32> to vector<392x9xf32>
    %cst_6 = arith.constant dense<0.000000e+00> : vector<392x8xf32>
    %6 = tpu.matmul %5, %0, %cst_6 {dimension_numbers = #tpu.dot_dimension_numbers<[1], [0], [0], [1], [0, 0, 1, 1], [], []>} : vector<392x9xf32>, vector<9x8xf32>, vector<392x8xf32> -> vector<392x8xf32>
    %7 = arith.maximumf %3, %6 : vector<392x8xf32>
    %c2 = arith.constant 2 : index
    %c0_7 = arith.constant 0 : index
    %c0_8 = arith.constant 0 : index
    %8 = vector.load %arg1[%c2, %c0_7, %c0_8] : memref<4x392x9xf32, #tpu.memory_space<vmem>>, vector<1x392x9xf32>
    %9 = vector.shape_cast %8 : vector<1x392x9xf32> to vector<392x9xf32>
    %cst_9 = arith.constant dense<0.000000e+00> : vector<392x8xf32>
    %10 = tpu.matmul %9, %0, %cst_9 {dimension_numbers = #tpu.dot_dimension_numbers<[1], [0], [0], [1], [0, 0, 1, 1], [], []>} : vector<392x9xf32>, vector<9x8xf32>, vector<392x8xf32> -> vector<392x8xf32>
    %11 = arith.maximumf %7, %10 : vector<392x8xf32>
    %c3 = arith.constant 3 : index
    %c0_10 = arith.constant 0 : index
    %c0_11 = arith.constant 0 : index
    %12 = vector.load %arg1[%c3, %c0_10, %c0_11] : memref<4x392x9xf32, #tpu.memory_space<vmem>>, vector<1x392x9xf32>
    %13 = vector.shape_cast %12 : vector<1x392x9xf32> to vector<392x9xf32>
    %cst_12 = arith.constant dense<0.000000e+00> : vector<392x8xf32>
    %14 = tpu.matmul %13, %0, %cst_12 {dimension_numbers = #tpu.dot_dimension_numbers<[1], [0], [0], [1], [0, 0, 1, 1], [], []>} : vector<392x9xf32>, vector<9x8xf32>, vector<392x8xf32> -> vector<392x8xf32>
    %15 = arith.maximumf %11, %14 : vector<392x8xf32>
    %c0_13 = arith.constant 0 : index
    %c0_14 = arith.constant 0 : index
    %16 = vector.load %arg3[%c0_13, %c0_14] : memref<1x8xf32, #tpu.memory_space<vmem>>, vector<1x8xf32>
    %17 = vector.broadcast %16 : vector<1x8xf32> to vector<392x8xf32>
    %18 = arith.addf %15, %17 : vector<392x8xf32>
    %cst_15 = arith.constant 0.000000e+00 : f32
    %19 = vector.broadcast %cst_15 : f32 to vector<392x8xf32>
    %20 = arith.maximumf %18, %19 : vector<392x8xf32>
    %c0_16 = arith.constant 0 : index
    %c0_17 = arith.constant 0 : index
    %21 = vector.load %arg4[%c0_16, %c0_17] : memref<392x8xf32, #tpu.memory_space<vmem>>, vector<392x8xf32>
    tpu.vector_store %arg4[%c0_16, %c0_17], %20 {strides = array<i32>} : memref<392x8xf32, #tpu.memory_space<vmem>>, vector<392x8xf32>,
    return
  }
  func.func @transform_0(%arg0: i32) -> (i32, i32, i32) {
    %c0_i32 = arith.constant 0 : i32
    %c0_i32_0 = arith.constant 0 : i32
    %c0_i32_1 = arith.constant 0 : i32
    return %c0_i32, %arg0, %c0_i32_0 : i32, i32, i32
  }
  func.func @transform_1(%arg0: i32) -> (i32, i32) {
    %c0_i32 = arith.constant 0 : i32
    %c0_i32_0 = arith.constant 0 : i32
    %c0_i32_1 = arith.constant 0 : i32
    return %c0_i32, %c0_i32_0 : i32, i32
  }
  func.func @transform_2(%arg0: i32) -> (i32, i32) {
    %c0_i32 = arith.constant 0 : i32
    %c0_i32_0 = arith.constant 0 : i32
    %c0_i32_1 = arith.constant 0 : i32
    return %c0_i32, %c0_i32_0 : i32, i32
  }
  func.func @transform_3(%arg0: i32) -> (i32, i32) {
    %c0_i32 = arith.constant 0 : i32
    %c0_i32_0 = arith.constant 0 : i32
    return %arg0, %c0_i32 : i32, i32
  }
}

module attributes {stable_mosaic.version = 11 : i64} {
  func.func @_conv_relu_pool_kernel(%arg0: i32, %arg1: memref<4x104x72xf32, #tpu.memory_space<vmem>>, %arg2: memref<72x16xf32, #tpu.memory_space<vmem>>, %arg3: memref<1x16xf32, #tpu.memory_space<vmem>>, %arg4: memref<104x16xf32, #tpu.memory_space<vmem>>) attributes {dimension_semantics = [#tpu.dimension_semantics<parallel>], iteration_bounds = array<i64: 1>, scalar_prefetch = 0 : i64, scratch_operands = 0 : i64, tpu.core_type = #tpu.core_type<tc>, window_params = [{transform_indices = @transform_0, window_bounds = array<i64: 4, 104, 72>}, {pipeline_mode = #tpu.pipeline_mode<synchronous>, transform_indices = @transform_1, window_bounds = array<i64: 72, 16>}, {pipeline_mode = #tpu.pipeline_mode<synchronous>, transform_indices = @transform_2, window_bounds = array<i64: 1, 16>}, {transform_indices = @transform_3, window_bounds = array<i64: 104, 16>}]} {
    %c0 = arith.constant 0 : index
    %c0_0 = arith.constant 0 : index
    %0 = vector.load %arg2[%c0, %c0_0] : memref<72x16xf32, #tpu.memory_space<vmem>>, vector<72x16xf32>
    %c0_1 = arith.constant 0 : index
    %c0_2 = arith.constant 0 : index
    %c0_3 = arith.constant 0 : index
    %1 = vector.load %arg1[%c0_1, %c0_2, %c0_3] : memref<4x104x72xf32, #tpu.memory_space<vmem>>, vector<1x104x72xf32>
    %2 = vector.shape_cast %1 : vector<1x104x72xf32> to vector<104x72xf32>
    %cst = arith.constant dense<0.000000e+00> : vector<104x16xf32>
    %3 = tpu.matmul %2, %0, %cst {dimension_numbers = #tpu.dot_dimension_numbers<[1], [0], [0], [1], [0, 0, 1, 1], [], []>} : vector<104x72xf32>, vector<72x16xf32>, vector<104x16xf32> -> vector<104x16xf32>
    %c1 = arith.constant 1 : index
    %c0_4 = arith.constant 0 : index
    %c0_5 = arith.constant 0 : index
    %4 = vector.load %arg1[%c1, %c0_4, %c0_5] : memref<4x104x72xf32, #tpu.memory_space<vmem>>, vector<1x104x72xf32>
    %5 = vector.shape_cast %4 : vector<1x104x72xf32> to vector<104x72xf32>
    %cst_6 = arith.constant dense<0.000000e+00> : vector<104x16xf32>
    %6 = tpu.matmul %5, %0, %cst_6 {dimension_numbers = #tpu.dot_dimension_numbers<[1], [0], [0], [1], [0, 0, 1, 1], [], []>} : vector<104x72xf32>, vector<72x16xf32>, vector<104x16xf32> -> vector<104x16xf32>
    %7 = arith.maximumf %3, %6 : vector<104x16xf32>
    %c2 = arith.constant 2 : index
    %c0_7 = arith.constant 0 : index
    %c0_8 = arith.constant 0 : index
    %8 = vector.load %arg1[%c2, %c0_7, %c0_8] : memref<4x104x72xf32, #tpu.memory_space<vmem>>, vector<1x104x72xf32>
    %9 = vector.shape_cast %8 : vector<1x104x72xf32> to vector<104x72xf32>
    %cst_9 = arith.constant dense<0.000000e+00> : vector<104x16xf32>
    %10 = tpu.matmul %9, %0, %cst_9 {dimension_numbers = #tpu.dot_dimension_numbers<[1], [0], [0], [1], [0, 0, 1, 1], [], []>} : vector<104x72xf32>, vector<72x16xf32>, vector<104x16xf32> -> vector<104x16xf32>
    %11 = arith.maximumf %7, %10 : vector<104x16xf32>
    %c3 = arith.constant 3 : index
    %c0_10 = arith.constant 0 : index
    %c0_11 = arith.constant 0 : index
    %12 = vector.load %arg1[%c3, %c0_10, %c0_11] : memref<4x104x72xf32, #tpu.memory_space<vmem>>, vector<1x104x72xf32>
    %13 = vector.shape_cast %12 : vector<1x104x72xf32> to vector<104x72xf32>
    %cst_12 = arith.constant dense<0.000000e+00> : vector<104x16xf32>
    %14 = tpu.matmul %13, %0, %cst_12 {dimension_numbers = #tpu.dot_dimension_numbers<[1], [0], [0], [1], [0, 0, 1, 1], [], []>} : vector<104x72xf32>, vector<72x16xf32>, vector<104x16xf32> -> vector<104x16xf32>
    %15 = arith.maximumf %11, %14 : vector<104x16xf32>
    %c0_13 = arith.constant 0 : index
    %c0_14 = arith.constant 0 : index
    %16 = vector.load %arg3[%c0_13, %c0_14] : memref<1x16xf32, #tpu.memory_space<vmem>>, vector<1x16xf32>
    %17 = vector.broadcast %16 : vector<1x16xf32> to vector<104x16xf32>
    %18 = arith.addf %15, %17 : vector<104x16xf32>
    %cst_15 = arith.constant 0.000000e+00 : f32
    %19 = vector.broadcast %cst_15 : f32 to vector<104x16xf32>
    %20 = arith.maximumf %18, %19 : vector<104x16xf32>
    %c0_16 = arith.constant 0 : index
    %c0_17 = arith.constant 0 : index
    %21 = vector.load %arg4[%c0_16, %c0_17] : memref<104x16xf32, #tpu.memory_space<vmem>>, vector<104x16xf32>
    tpu.vector_store %arg4[%c0_16, %c0_17], %20 {strides = array<i32>} : memref<104x16xf32, #tpu.memory_space<vmem>>, vector<104x16xf32>,
    return
  }
  func.func @transform_0(%arg0: i32) -> (i32, i32, i32) {
    %c0_i32 = arith.constant 0 : i32
    %c0_i32_0 = arith.constant 0 : i32
    %c0_i32_1 = arith.constant 0 : i32
    return %c0_i32, %arg0, %c0_i32_0 : i32, i32, i32
  }
  func.func @transform_1(%arg0: i32) -> (i32, i32) {
    %c0_i32 = arith.constant 0 : i32
    %c0_i32_0 = arith.constant 0 : i32
    %c0_i32_1 = arith.constant 0 : i32
    return %c0_i32, %c0_i32_0 : i32, i32
  }
  func.func @transform_2(%arg0: i32) -> (i32, i32) {
    %c0_i32 = arith.constant 0 : i32
    %c0_i32_0 = arith.constant 0 : i32
    %c0_i32_1 = arith.constant 0 : i32
    return %c0_i32, %c0_i32_0 : i32, i32
  }
  func.func @transform_3(%arg0: i32) -> (i32, i32) {
    %c0_i32 = arith.constant 0 : i32
    %c0_i32_0 = arith.constant 0 : i32
    return %arg0, %c0_i32 : i32, i32
  }
}

module attributes {stable_mosaic.version = 11 : i64} {
  func.func @_matmul_bias_kernel(%arg0: i32, %arg1: memref<8x784xf32, #tpu.memory_space<vmem>>, %arg2: memref<784x128xf32, #tpu.memory_space<vmem>>, %arg3: memref<1x128xf32, #tpu.memory_space<vmem>>, %arg4: memref<8x128xf32, #tpu.memory_space<vmem>>) attributes {dimension_semantics = [#tpu.dimension_semantics<parallel>], iteration_bounds = array<i64: 1>, scalar_prefetch = 0 : i64, scratch_operands = 0 : i64, tpu.core_type = #tpu.core_type<tc>, window_params = [{transform_indices = @transform_0, window_bounds = array<i64: 8, 784>}, {pipeline_mode = #tpu.pipeline_mode<synchronous>, transform_indices = @transform_1, window_bounds = array<i64: 784, 128>}, {pipeline_mode = #tpu.pipeline_mode<synchronous>, transform_indices = @transform_2, window_bounds = array<i64: 1, 128>}, {transform_indices = @transform_3, window_bounds = array<i64: 8, 128>}]} {
    %c0 = arith.constant 0 : index
    %c0_0 = arith.constant 0 : index
    %0 = vector.load %arg1[%c0, %c0_0] : memref<8x784xf32, #tpu.memory_space<vmem>>, vector<8x784xf32>
    %c0_1 = arith.constant 0 : index
    %c0_2 = arith.constant 0 : index
    %1 = vector.load %arg2[%c0_1, %c0_2] : memref<784x128xf32, #tpu.memory_space<vmem>>, vector<784x128xf32>
    %cst = arith.constant dense<0.000000e+00> : vector<8x128xf32>
    %2 = tpu.matmul %0, %1, %cst {dimension_numbers = #tpu.dot_dimension_numbers<[1], [0], [0], [1], [0, 0, 1, 1], [], []>} : vector<8x784xf32>, vector<784x128xf32>, vector<8x128xf32> -> vector<8x128xf32>
    %c0_3 = arith.constant 0 : index
    %c0_4 = arith.constant 0 : index
    %3 = vector.load %arg3[%c0_3, %c0_4] : memref<1x128xf32, #tpu.memory_space<vmem>>, vector<1x128xf32>
    %4 = vector.broadcast %3 : vector<1x128xf32> to vector<8x128xf32>
    %5 = arith.addf %2, %4 : vector<8x128xf32>
    %c0_5 = arith.constant 0 : index
    %c0_6 = arith.constant 0 : index
    %6 = vector.load %arg4[%c0_5, %c0_6] : memref<8x128xf32, #tpu.memory_space<vmem>>, vector<8x128xf32>
    tpu.vector_store %arg4[%c0_5, %c0_6], %5 {strides = array<i32>} : memref<8x128xf32, #tpu.memory_space<vmem>>, vector<8x128xf32>,
    return
  }
  func.func @transform_0(%arg0: i32) -> (i32, i32) {
    %c0_i32 = arith.constant 0 : i32
    %c0_i32_0 = arith.constant 0 : i32
    return %arg0, %c0_i32 : i32, i32
  }
  func.func @transform_1(%arg0: i32) -> (i32, i32) {
    %c0_i32 = arith.constant 0 : i32
    %c0_i32_0 = arith.constant 0 : i32
    %c0_i32_1 = arith.constant 0 : i32
    return %c0_i32, %c0_i32_0 : i32, i32
  }
  func.func @transform_2(%arg0: i32) -> (i32, i32) {
    %c0_i32 = arith.constant 0 : i32
    %c0_i32_0 = arith.constant 0 : i32
    %c0_i32_1 = arith.constant 0 : i32
    return %c0_i32, %c0_i32_0 : i32, i32
  }
  func.func @transform_3(%arg0: i32) -> (i32, i32) {
    %c0_i32 = arith.constant 0 : i32
    %c0_i32_0 = arith.constant 0 : i32
    return %arg0, %c0_i32 : i32, i32
  }
}

</mosaic_0001>

<bundles_post_ra>
// kernel: cnn_forward.3
= control target key start
LH: loop header
LB: loop body
LE: loop exit
PB: predicated region body
PF: predicated region fallthrough
CT: control target
= control target key end

     0   :  { %vm213_vm0 = vcmask 1040384   ;;  %vm65_vm1 = vcmask 72704   ;;  %vm1713_vm2 = vcmask 64512   ;;  %s3181_s1 = inlined_call_operand.vmem [shape: f32[9,8], index: 1, kind: input, shape index: {}]   ;;  %s3182_s0 = inlined_call_operand.vmem [shape: f32[4,392,9], index: 0, kind: input, shape index: {}]   ;;  %s3183_s2 = inlined_call_operand.vmem [shape: f32[1,8], index: 2, kind: input, shape index: {}]   ;;  %s3184_s3 = inlined_call_operand.vmem [shape: f32[392,8], index: 3, kind: output, shape index: {}]  }
   0x1   :  { %v15_v0 = vld [vmem:[%s3181_s1 + $0x8] sm:$0x1]  ;;  %v14_v1 = vld [vmem:[%s3181_s1] sm:$0xff]  ;;  %v1916_v2 = vld [vmem:[%s3182_s0 + $0x310] sm:$0xff] }
   0x2   :  { %1965 = vmatpush.msk.msra.mxu2 %vm213_vm0, %v15_v0  ;;  %2064 = vmatpush.msk.msra.mxu3 %vm213_vm0, %v15_v0  ;;  %v2015_v3 = vld [vmem:[%s3182_s0 + $0x498] sm:$0xff]  ;;  %v16_v4 = vld [vmem:[%s3182_s0] sm:$0xff]  ;;  %v1817_v5 = vld [vmem:[%s3182_s0 + $0x188] sm:$0xff] }
   0x3   :  { %1767 = vmatpush.msk.msra.mxu0 %vm213_vm0, %v15_v0  ;;  %1866 = vmatpush.msk.msra.mxu1 %vm213_vm0, %v15_v0  ;;  %v1917_v6 = vld [vmem:[%s3182_s0 + $0x318] sm:$0xff]  ;;  %v2016_v7 = vld [vmem:[%s3182_s0 + $0x4a0] sm:$0xff]  ;;  %v17_v8 = vld [vmem:[%s3182_s0 + $0x8] sm:$0xff] }
   0x4   :  { %1003 = vmatpush.msra.mxu2 %v14_v1  ;;  %1413 = vmatpush.msra.mxu3 %v14_v1  ;;  %v1818_v9 = vld [vmem:[%s3182_s0 + $0x190] sm:$0xff]  ;;  %v1918_v10 = vld [vmem:[%s3182_s0 + $0x320] sm:$0xff]  ;;  %v2017_v11 = vld [vmem:[%s3182_s0 + $0x4a8] sm:$0xff] }
   0x5   :  { %1966 = vmatmul.msk.f32.vlgmr.msra.gmra.mxu2 %vm65_vm1, %v1916_v2  ;;  %2065 = vmatmul.msk.f32.vlgmr.msra.gmra.mxu3 %vm65_vm1, %v2015_v3  ;;  %v18_v12 = vld [vmem:[%s3182_s0 + $0x10] sm:$0xff]  ;;  %v1819_v13 = vld [vmem:[%s3182_s0 + $0x198] sm:$0xff]  ;;  %v1919_v14 = vld [vmem:[%s3182_s0 + $0x328] sm:$0xff] }
   0x6   :  { %232 = vmatpush.msra.mxu0 %v14_v1  ;;  %593 = vmatpush.msra.mxu1 %v14_v1  ;;  %v2018_v15 = vld [vmem:[%s3182_s0 + $0x4b0] sm:$0xff]  ;;  %v19_v16 = vld [vmem:[%s3182_s0 + $0x18] sm:$0xff]  ;;  %v1820_v17 = vld [vmem:[%s3182_s0 + $0x1a0] sm:$0xff] }
   0x7   :  { %1768 = vmatmul.msk.f32.vlgmr.msra.gmra.mxu0 %vm65_vm1, %v16_v4  ;;  %1867 = vmatmul.msk.f32.vlgmr.msra.gmra.mxu1 %vm65_vm1, %v1817_v5  ;;  %v1920_v18 = vld [vmem:[%s3182_s0 + $0x330] sm:$0xff]  ;;  %v2019_v19 = vld [vmem:[%s3182_s0 + $0x4b8] sm:$0xff]  ;;  %v20_v20 = vld [vmem:[%s3182_s0 + $0x20] sm:$0xff] }
   0x8   :  { %v1821_v21 = vld [vmem:[%s3182_s0 + $0x1a8] sm:$0xff]  ;;  %v1921_v22 = vld [vmem:[%s3182_s0 + $0x338] sm:$0xff]  ;;  %v2020_v23 = vld [vmem:[%s3182_s0 + $0x4c0] sm:$0xff] }
   0x9   :  { %v21_v24 = vld [vmem:[%s3182_s0 + $0x28] sm:$0xff]  ;;  %v1822_v25 = vld [vmem:[%s3182_s0 + $0x1b0] sm:$0xff]  ;;  %v1922_v26 = vld [vmem:[%s3182_s0 + $0x340] sm:$0xff] }
   0xa   :  { %v2021_v27 = vld [vmem:[%s3182_s0 + $0x4c8] sm:$0xff]  ;;  %v22_v28 = vld [vmem:[%s3182_s0 + $0x30] sm:$0xff]  ;;  %v1823_v29 = vld [vmem:[%s3182_s0 + $0x1b8] sm:$0xff] }
   0xb   :  { %v1923_v30 = vld [vmem:[%s3182_s0 + $0x348] sm:$0xff]  ;;  %v2022_v31 = vld [vmem:[%s3182_s0 + $0x4d0] sm:$0xff]  ;;  %v23_v32 = vld [vmem:[%s3182_s0 + $0x38] sm:$0xff] }
   0xc   :  { %v1824_v33 = vld [vmem:[%s3182_s0 + $0x1c0] sm:$0xff]  ;;  %v1924_v34 = vld [vmem:[%s3182_s0 + $0x350] sm:$0xff]  ;;  %v2023_v35 = vld [vmem:[%s3182_s0 + $0x4d8] sm:$0xff] }
   0xd   :  { %1967 = vmatmul.msk.f32.gmra.mxu2 %vm65_vm1, %v1917_v6  ;;  %2066 = vmatmul.msk.f32.gmra.mxu3 %vm65_vm1, %v2016_v7  ;;  %v24_v36 = vld [vmem:[%s3182_s0 + $0x40] sm:$0xff]  ;;  %v1825_v37 = vld [vmem:[%s3182_s0 + $0x1c8] sm:$0xff]  ;;  %v1925_v38 = vld [vmem:[%s3182_s0 + $0x358] sm:$0xff] }
   0xe   :  { %v2024_v39 = vld [vmem:[%s3182_s0 + $0x4e0] sm:$0xff]  ;;  %v25_v40 = vld [vmem:[%s3182_s0 + $0x48] sm:$0xff]  ;;  %v1826_v41 = vld [vmem:[%s3182_s0 + $0x1d0] sm:$0xff] }
   0xf   :  { %1769 = vmatmul.msk.f32.gmra.mxu0 %vm65_vm1, %v17_v8  ;;  %1868 = vmatmul.msk.f32.gmra.mxu1 %vm65_vm1, %v1818_v9  ;;  %v1926_v42 = vld [vmem:[%s3182_s0 + $0x360] sm:$0xff]  ;;  %v2025_v43 = vld [vmem:[%s3182_s0 + $0x4e8] sm:$0xff]  ;;  %v26_v44 = vld [vmem:[%s3182_s0 + $0x50] sm:$0xff] }
  0x10   :  { %v1827_v45 = vld [vmem:[%s3182_s0 + $0x1d8] sm:$0xff]  ;;  %v1927_v46 = vld [vmem:[%s3182_s0 + $0x368] sm:$0xff]  ;;  %v2026_v47 = vld [vmem:[%s3182_s0 + $0x4f0] sm:$0xff] }
  0x11   :  { %v27_v48 = vld [vmem:[%s3182_s0 + $0x58] sm:$0xff]  ;;  %v1828_v49 = vld [vmem:[%s3182_s0 + $0x1e0] sm:$0xff]  ;;  %v1928_v50 = vld [vmem:[%s3182_s0 + $0x370] sm:$0xff] }
  0x12   :  { %v2027_v51 = vld [vmem:[%s3182_s0 + $0x4f8] sm:$0xff]  ;;  %v28_v52 = vld [vmem:[%s3182_s0 + $0x60] sm:$0xff]  ;;  %v1829_v53 = vld [vmem:[%s3182_s0 + $0x1e8] sm:$0xff] }
  0x13   :  { %v1929_v54 = vld [vmem:[%s3182_s0 + $0x378] sm:$0xff]  ;;  %v2028_v55 = vld [vmem:[%s3182_s0 + $0x500] sm:$0xff]  ;;  %v29_v56 = vld [vmem:[%s3182_s0 + $0x68] sm:$0xff] }
  0x14   :  { %v1830_v57 = vld [vmem:[%s3182_s0 + $0x1f0] sm:$0xff]  ;;  %v1930_v58 = vld [vmem:[%s3182_s0 + $0x380] sm:$0xff]  ;;  %v2029_v59 = vld [vmem:[%s3182_s0 + $0x508] sm:$0xff] }
  0x15   :  { %1968 = vmatmul.msk.f32.gmra.mxu2 %vm65_vm1, %v1918_v10  ;;  %2067 = vmatmul.msk.f32.gmra.mxu3 %vm65_vm1, %v2017_v11  ;;  %v30_v60 = vld [vmem:[%s3182_s0 + $0x70] sm:$0xff]  ;;  %v1831_v61 = vld [vmem:[%s3182_s0 + $0x1f8] sm:$0xff]  ;;  %v1931_v62 = vld [vmem:[%s3182_s0 + $0x388] sm:$0xff] }
  0x16   :  { %v2030_v63 = vld [vmem:[%s3182_s0 + $0x510] sm:$0xff]  ;;  %v31_v0 = vld [vmem:[%s3182_s0 + $0x78] sm:$0xff]  ;;  %v1832_v1 = vld [vmem:[%s3182_s0 + $0x200] sm:$0xff] }
  0x17   :  { %1770 = vmatmul.msk.f32.gmra.mxu0 %vm65_vm1, %v18_v12  ;;  %1869 = vmatmul.msk.f32.gmra.mxu1 %vm65_vm1, %v1819_v13  ;;  %v1932_v2 = vld [vmem:[%s3182_s0 + $0x390] sm:$0xff]  ;;  %v2031_v3 = vld [vmem:[%s3182_s0 + $0x518] sm:$0xff]  ;;  %v32_v6 = vld [vmem:[%s3182_s0 + $0x80] sm:$0xff] }
  0x18   :  { %v1833_v7 = vld [vmem:[%s3182_s0 + $0x208] sm:$0xff]  ;;  %v2417_v12 = vld [vmem:[%s3183_s2] ss:$0 sm:$0xff]  ;;  %v1933_v13 = vld [vmem:[%s3182_s0 + $0x398] sm:$0xff] }
  0x1d   :  { %1969 = vmatmul.msk.f32.gmra.mxu2 %vm65_vm1, %v1919_v14  ;;  %2068 = vmatmul.msk.f32.gmra.mxu3 %vm65_vm1, %v2018_v15  ;;  %v2032_v14 = vld [vmem:[%s3182_s0 + $0x520] sm:$0xff] }
  0x1f   :  { %1771 = vmatmul.msk.f32.gmra.mxu0 %vm65_vm1, %v19_v16  ;;  %1870 = vmatmul.msk.f32.gmra.mxu1 %vm65_vm1, %v1820_v17 }
  0x25   :  { %1970 = vmatmul.msk.f32.gmra.mxu2 %vm65_vm1, %v1920_v18  ;;  %2069 = vmatmul.msk.f32.gmra.mxu3 %vm65_vm1, %v2019_v19  ;;  %v33_v18 = vld [vmem:[%s3182_s0 + $0x88] sm:$0xff]  ;;  %v1834_v19 = vld [vmem:[%s3182_s0 + $0x210] sm:$0xff] }
  0x27   :  { %1772 = vmatmul.msk.f32.gmra.mxu0 %vm65_vm1, %v20_v20  ;;  %1871 = vmatmul.msk.f32.gmra.mxu1 %vm65_vm1, %v1821_v21 }
  0x2d   :  { %1971 = vmatmul.msk.f32.gmra.mxu2 %vm65_vm1, %v1921_v22  ;;  %2070 = vmatmul.msk.f32.gmra.mxu3 %vm65_vm1, %v2020_v23 }
  0x2f   :  { %1773 = vmatmul.msk.f32.gmra.mxu0 %vm65_vm1, %v21_v24  ;;  %1872 = vmatmul.msk.f32.gmra.mxu1 %vm65_vm1, %v1822_v25 }
  0x35   :  { %1972 = vmatmul.msk.f32.gmra.mxu2 %vm65_vm1, %v1922_v26  ;;  %2071 = vmatmul.msk.f32.gmra.mxu3 %vm65_vm1, %v2021_v27  ;;  %v1934_v26 = vld [vmem:[%s3182_s0 + $0x3a0] sm:$0xff]  ;;  %v2033_v27 = vld [vmem:[%s3182_s0 + $0x528] sm:$0xff] }
  0x37   :  { %1774 = vmatmul.msk.f32.gmra.mxu0 %vm65_vm1, %v22_v28  ;;  %1873 = vmatmul.msk.f32.gmra.mxu1 %vm65_vm1, %v1823_v29 }
  0x3d   :  { %1973 = vmatmul.msk.f32.gmra.mxu2 %vm65_vm1, %v1923_v30  ;;  %2072 = vmatmul.msk.f32.gmra.mxu3 %vm65_vm1, %v2022_v31  ;;  %v34_v31 = vld [vmem:[%s3182_s0 + $0x90] sm:$0xff] }
  0x3f   :  { %1775 = vmatmul.msk.f32.gmra.mxu0 %vm65_vm1, %v23_v32  ;;  %1874 = vmatmul.msk.f32.gmra.mxu1 %vm65_vm1, %v1824_v33  ;;  %v1835_v32 = vld [vmem:[%s3182_s0 + $0x218] sm:$0xff] }
  0x45   :  { %1974 = vmatmul.msk.f32.gmra.mxu2 %vm65_vm1, %v1924_v34  ;;  %2073 = vmatmul.msk.f32.gmra.mxu3 %vm65_vm1, %v2023_v35 }
  0x47   :  { %1776 = vmatmul.msk.f32.gmra.mxu0 %vm65_vm1, %v24_v36  ;;  %1875 = vmatmul.msk.f32.gmra.mxu1 %vm65_vm1, %v1825_v37 }
  0x4d   :  { %1975 = vmatmul.msk.f32.gmra.mxu2 %vm65_vm1, %v1925_v38  ;;  %2074 = vmatmul.msk.f32.gmra.mxu3 %vm65_vm1, %v2024_v39  ;;  %v1935_v39 = vld [vmem:[%s3182_s0 + $0x3a8] sm:$0xff] }
  0x4f   :  { %1777 = vmatmul.msk.f32.gmra.mxu0 %vm65_vm1, %v25_v40  ;;  %1876 = vmatmul.msk.f32.gmra.mxu1 %vm65_vm1, %v1826_v41  ;;  %v2034_v40 = vld [vmem:[%s3182_s0 + $0x530] sm:$0xff] }
  0x55   :  { %1976 = vmatmul.msk.f32.gmra.mxu2 %vm65_vm1, %v1926_v42  ;;  %2075 = vmatmul.msk.f32.gmra.mxu3 %vm65_vm1, %v2025_v43 }
  0x57   :  { %1778 = vmatmul.msk.f32.gmra.mxu0 %vm65_vm1, %v26_v44  ;;  %1877 = vmatmul.msk.f32.gmra.mxu1 %vm65_vm1, %v1827_v45  ;;  %v35_v44 = vld [vmem:[%s3182_s0 + $0x98] sm:$0xff]  ;;  %v1836_v45 = vld [vmem:[%s3182_s0 + $0x220] sm:$0xff] }
  0x5d   :  { %1977 = vmatmul.msk.f32.gmra.mxu2 %vm65_vm1, %v1927_v46  ;;  %2076 = vmatmul.msk.f32.gmra.mxu3 %vm65_vm1, %v2026_v47 }
  0x5f   :  { %1779 = vmatmul.msk.f32.gmra.mxu0 %vm65_vm1, %v27_v48  ;;  %1878 = vmatmul.msk.f32.gmra.mxu1 %vm65_vm1, %v1828_v49 }
  0x65   :  { %1978 = vmatmul.msk.f32.gmra.mxu2 %vm65_vm1, %v1928_v50  ;;  %2077 = vmatmul.msk.f32.gmra.mxu3 %vm65_vm1, %v2027_v51 }
  0x67   :  { %1780 = vmatmul.msk.f32.gmra.mxu0 %vm65_vm1, %v28_v52  ;;  %1879 = vmatmul.msk.f32.gmra.mxu1 %vm65_vm1, %v1829_v53  ;;  %v1936_v52 = vld [vmem:[%s3182_s0 + $0x3b0] sm:$0xff]  ;;  %v2035_v53 = vld [vmem:[%s3182_s0 + $0x538] sm:$0xff] }
  0x6d   :  { %1979 = vmatmul.msk.f32.gmra.mxu2 %vm65_vm1, %v1929_v54  ;;  %2078 = vmatmul.msk.f32.gmra.mxu3 %vm65_vm1, %v2028_v55 }
  0x6f   :  { %1781 = vmatmul.msk.f32.gmra.mxu0 %vm65_vm1, %v29_v56  ;;  %1880 = vmatmul.msk.f32.gmra.mxu1 %vm65_vm1, %v1830_v57  ;;  %v36_v57 = vld [vmem:[%s3182_s0 + $0xa0] sm:$0xff] }
  0x75   :  { %1980 = vmatmul.msk.f32.gmra.mxu2 %vm65_vm1, %v1930_v58  ;;  %2079 = vmatmul.msk.f32.gmra.mxu3 %vm65_vm1, %v2029_v59  ;;  %v1837_v58 = vld [vmem:[%s3182_s0 + $0x228] sm:$0xff] }
  0x77   :  { %1782 = vmatmul.msk.f32.gmra.mxu0 %vm65_vm1, %v30_v60  ;;  %1881 = vmatmul.msk.f32.gmra.mxu1 %vm65_vm1, %v1831_v61 }
  0x7d   :  { %1981 = vmatmul.msk.f32.gmra.mxu2 %vm65_vm1, %v1931_v62  ;;  %2080 = vmatmul.msk.f32.gmra.mxu3 %vm65_vm1, %v2030_v63 }
  0x7f   :  { %1783 = vmatmul.msk.f32.gmra.mxu0 %vm65_vm1, %v31_v0  ;;  %1882 = vmatmul.msk.f32.gmra.mxu1 %vm65_vm1, %v1832_v1  ;;  %v1937_v1 = vld [vmem:[%s3182_s0 + $0x3b8] sm:$0xff] }
  0x84   :  { %v234_v4 = vpop.f32.mrf.mxu0  ;;  %v595_v5 = vpop.f32.mrf.mxu1 }
  0x85   :  { %1982 = vmatmul.msk.f32.gmra.mxu2 %vm65_vm1, %v1932_v2  ;;  %v742_v8 = vmax.f32 %v234_v4, %v595_v5  ;;  %2081 = vmatmul.msk.f32.gmra.mxu3 %vm65_vm1, %v2031_v3  ;;  %v2036_v2 = vld [vmem:[%s3182_s0 + $0x540] sm:$0xff] }
  0x87   :  { %1784 = vmatmul.msk.f32.gmra.mxu0 %vm65_vm1, %v32_v6  ;;  %1883 = vmatmul.msk.f32.gmra.mxu1 %vm65_vm1, %v1833_v7  ;;  %v37_v6 = vld [vmem:[%s3182_s0 + $0xa8] sm:$0xff]  ;;  %v1838_v7 = vld [vmem:[%s3182_s0 + $0x230] sm:$0xff] }
  0x88   :  { %v1005_v9 = vpop.f32.mrf.mxu2  ;;  %v1415_v10 = vpop.f32.mrf.mxu3 }
  0x89   :  { %v1152_v11 = vmax.f32 %v742_v8, %v1005_v9 }
  0x8b   :  { %v1562_v15 = vmax.f32 %v1152_v11, %v1415_v10 }
  0x8c   :  { %v237_v16 = vpop.f32.mrf.mxu0  ;;  %v598_v17 = vpop.f32.mrf.mxu1 }
  0x8d   :  { %v1615_v20 = vadd.f32 %v2417_v12, %v1562_v15  ;;  %1983 = vmatmul.msk.f32.gmra.mxu2 %vm65_vm1, %v1933_v13  ;;  %v743_v21 = vmax.f32 %v237_v16, %v598_v17  ;;  %2082 = vmatmul.msk.f32.gmra.mxu3 %vm65_vm1, %v2032_v14  ;;  %v1938_v15 = vld [vmem:[%s3182_s0 + $0x3c0] sm:$0xff]  ;;  %v2037_v16 = vld [vmem:[%s3182_s0 + $0x548] sm:$0xff] }
  0x8f   :  { %v1664_v22 = vmax.f32 %v1615_v20, 0.0  ;;  %1785 = vmatmul.msk.f32.gmra.mxu0 %vm65_vm1, %v33_v18  ;;  %1884 = vmatmul.msk.f32.gmra.mxu1 %vm65_vm1, %v1834_v19  ;;  %v38_v20 = vld [vmem:[%s3182_s0 + $0xb0] sm:$0xff] }
  0x90   :  { %v1008_v23 = vpop.f32.mrf.mxu2  ;;  %v1418_v24 = vpop.f32.mrf.mxu3 }
  0x91   :  { %1714 = vst.msk [vmem:[%s3184_s3] sm:$0xff] %vm1713_vm2, %v1664_v22  ;;  %v1153_v25 = vmax.f32 %v743_v21, %v1008_v23  ;;  %v1839_v21 = vld [vmem:[%s3182_s0 + $0x238] sm:$0xff] }
  0x93   :  { %v1563_v28 = vmax.f32 %v1153_v25, %v1418_v24 }
  0x94   :  { %v240_v29 = vpop.f32.mrf.mxu0  ;;  %v601_v30 = vpop.f32.mrf.mxu1 }
  0x95   :  { %v1616_v33 = vadd.f32 %v2417_v12, %v1563_v28  ;;  %1984 = vmatmul.msk.f32.gmra.mxu2 %vm65_vm1, %v1934_v26  ;;  %v744_v34 = vmax.f32 %v240_v29, %v601_v30  ;;  %2083 = vmatmul.msk.f32.gmra.mxu3 %vm65_vm1, %v2033_v27  ;;  %v1939_v28 = vld [vmem:[%s3182_s0 + $0x3c8] sm:$0xff]  ;;  %v2038_v29 = vld [vmem:[%s3182_s0 + $0x550] sm:$0xff] }
  0x97   :  { %v1665_v35 = vmax.f32 %v1616_v33, 0.0  ;;  %1786 = vmatmul.msk.f32.gmra.mxu0 %vm65_vm1, %v34_v31  ;;  %1885 = vmatmul.msk.f32.gmra.mxu1 %vm65_vm1, %v1835_v32  ;;  %v39_v33 = vld [vmem:[%s3182_s0 + $0xb8] sm:$0xff] }
  0x98   :  { %v1011_v36 = vpop.f32.mrf.mxu2  ;;  %v1421_v37 = vpop.f32.mrf.mxu3 }
  0x99   :  { %1715 = vst.msk [vmem:[%s3184_s3 + $0x8] sm:$0xff] %vm1713_vm2, %v1665_v35  ;;  %v1154_v38 = vmax.f32 %v744_v34, %v1011_v36  ;;  %v1840_v34 = vld [vmem:[%s3182_s0 + $0x240] sm:$0xff] }
  0x9b   :  { %v1564_v41 = vmax.f32 %v1154_v38, %v1421_v37 }
  0x9c   :  { %v243_v42 = vpop.f32.mrf.mxu0  ;;  %v604_v43 = vpop.f32.mrf.mxu1 }
  0x9d   :  { %v1617_v46 = vadd.f32 %v2417_v12, %v1564_v41  ;;  %1985 = vmatmul.msk.f32.gmra.mxu2 %vm65_vm1, %v1935_v39  ;;  %v745_v47 = vmax.f32 %v243_v42, %v604_v43  ;;  %2084 = vmatmul.msk.f32.gmra.mxu3 %vm65_vm1, %v2034_v40  ;;  %v1940_v41 = vld [vmem:[%s3182_s0 + $0x3d0] sm:$0xff]  ;;  %v2039_v42 = vld [vmem:[%s3182_s0 + $0x558] sm:$0xff] }
  0x9f   :  { %v1666_v48 = vmax.f32 %v1617_v46, 0.0  ;;  %1787 = vmatmul.msk.f32.gmra.mxu0 %vm65_vm1, %v35_v44  ;;  %1886 = vmatmul.msk.f32.gmra.mxu1 %vm65_vm1, %v1836_v45  ;;  %v40_v46 = vld [vmem:[%s3182_s0 + $0xc0] sm:$0xff] }
  0xa0   :  { %v1014_v49 = vpop.f32.mrf.mxu2  ;;  %v1424_v50 = vpop.f32.mrf.mxu3 }
  0xa1   :  { %1716 = vst.msk [vmem:[%s3184_s3 + $0x10] sm:$0xff] %vm1713_vm2, %v1666_v48  ;;  %v1155_v51 = vmax.f32 %v745_v47, %v1014_v49  ;;  %v1841_v47 = vld [vmem:[%s3182_s0 + $0x248] sm:$0xff] }
  0xa3   :  { %v1565_v54 = vmax.f32 %v1155_v51, %v1424_v50 }
  0xa4   :  { %v246_v55 = vpop.f32.mrf.mxu0  ;;  %v607_v56 = vpop.f32.mrf.mxu1 }
  0xa5   :  { %v1618_v59 = vadd.f32 %v2417_v12, %v1565_v54  ;;  %1986 = vmatmul.msk.f32.gmra.mxu2 %vm65_vm1, %v1936_v52  ;;  %v746_v60 = vmax.f32 %v246_v55, %v607_v56  ;;  %2085 = vmatmul.msk.f32.gmra.mxu3 %vm65_vm1, %v2035_v53  ;;  %v1941_v54 = vld [vmem:[%s3182_s0 + $0x3d8] sm:$0xff]  ;;  %v2040_v55 = vld [vmem:[%s3182_s0 + $0x560] sm:$0xff] }
  0xa7   :  { %v1667_v61 = vmax.f32 %v1618_v59, 0.0  ;;  %1788 = vmatmul.msk.f32.gmra.mxu0 %vm65_vm1, %v36_v57  ;;  %1887 = vmatmul.msk.f32.gmra.mxu1 %vm65_vm1, %v1837_v58  ;;  %v41_v59 = vld [vmem:[%s3182_s0 + $0xc8] sm:$0xff] }
  0xa8   :  { %v1017_v62 = vpop.f32.mrf.mxu2  ;;  %v1427_v63 = vpop.f32.mrf.mxu3 }
  0xa9   :  { %1717 = vst.msk [vmem:[%s3184_s3 + $0x18] sm:$0xff] %vm1713_vm2, %v1667_v61  ;;  %v1156_v0 = vmax.f32 %v746_v60, %v1017_v62  ;;  %v1842_v60 = vld [vmem:[%s3182_s0 + $0x250] sm:$0xff] }
  0xab   :  { %v1566_v3 = vmax.f32 %v1156_v0, %v1427_v63 }
  0xac   :  { %v249_v4 = vpop.f32.mrf.mxu0  ;;  %v610_v5 = vpop.f32.mrf.mxu1 }
  0xad   :  { %v1619_v8 = vadd.f32 %v2417_v12, %v1566_v3  ;;  %1987 = vmatmul.msk.f32.gmra.mxu2 %vm65_vm1, %v1937_v1  ;;  %v747_v9 = vmax.f32 %v249_v4, %v610_v5  ;;  %2086 = vmatmul.msk.f32.gmra.mxu3 %vm65_vm1, %v2036_v2  ;;  %v1942_v3 = vld [vmem:[%s3182_s0 + $0x3e0] sm:$0xff]  ;;  %v2041_v4 = vld [vmem:[%s3182_s0 + $0x568] sm:$0xff] }
  0xaf   :  { %v1668_v10 = vmax.f32 %v1619_v8, 0.0  ;;  %1789 = vmatmul.msk.f32.gmra.mxu0 %vm65_vm1, %v37_v6  ;;  %1888 = vmatmul.msk.f32.gmra.mxu1 %vm65_vm1, %v1838_v7  ;;  %v42_v8 = vld [vmem:[%s3182_s0 + $0xd0] sm:$0xff] }
  0xb0   :  { %v1020_v11 = vpop.f32.mrf.mxu2  ;;  %v1430_v13 = vpop.f32.mrf.mxu3 }
  0xb1   :  { %1718 = vst.msk [vmem:[%s3184_s3 + $0x20] sm:$0xff] %vm1713_vm2, %v1668_v10  ;;  %v1157_v14 = vmax.f32 %v747_v9, %v1020_v11  ;;  %v1843_v9 = vld [vmem:[%s3182_s0 + $0x258] sm:$0xff] }
  0xb3   :  { %v1567_v17 = vmax.f32 %v1157_v14, %v1430_v13 }
  0xb4   :  { %v252_v18 = vpop.f32.mrf.mxu0  ;;  %v613_v19 = vpop.f32.mrf.mxu1 }
  0xb5   :  { %v1620_v22 = vadd.f32 %v2417_v12, %v1567_v17  ;;  %1988 = vmatmul.msk.f32.gmra.mxu2 %vm65_vm1, %v1938_v15  ;;  %v748_v23 = vmax.f32 %v252_v18, %v613_v19  ;;  %2087 = vmatmul.msk.f32.gmra.mxu3 %vm65_vm1, %v2037_v16  ;;  %v1943_v17 = vld [vmem:[%s3182_s0 + $0x3e8] sm:$0xff]  ;;  %v2042_v18 = vld [vmem:[%s3182_s0 + $0x570] sm:$0xff] }
  0xb7   :  { %v1669_v24 = vmax.f32 %v1620_v22, 0.0  ;;  %1790 = vmatmul.msk.f32.gmra.mxu0 %vm65_vm1, %v38_v20  ;;  %1889 = vmatmul.msk.f32.gmra.mxu1 %vm65_vm1, %v1839_v21  ;;  %v43_v22 = vld [vmem:[%s3182_s0 + $0xd8] sm:$0xff] }
  0xb8   :  { %v1023_v25 = vpop.f32.mrf.mxu2  ;;  %v1433_v26 = vpop.f32.mrf.mxu3 }
  0xb9   :  { %1719 = vst.msk [vmem:[%s3184_s3 + $0x28] sm:$0xff] %vm1713_vm2, %v1669_v24  ;;  %v1158_v27 = vmax.f32 %v748_v23, %v1023_v25  ;;  %v1844_v23 = vld [vmem:[%s3182_s0 + $0x260] sm:$0xff] }
  0xbb   :  { %v1568_v30 = vmax.f32 %v1158_v27, %v1433_v26 }
  0xbc   :  { %v255_v31 = vpop.f32.mrf.mxu0  ;;  %v616_v32 = vpop.f32.mrf.mxu1 }
  0xbd   :  { %v1621_v35 = vadd.f32 %v2417_v12, %v1568_v30  ;;  %1989 = vmatmul.msk.f32.gmra.mxu2 %vm65_vm1, %v1939_v28  ;;  %v749_v36 = vmax.f32 %v255_v31, %v616_v32  ;;  %2088 = vmatmul.msk.f32.gmra.mxu3 %vm65_vm1, %v2038_v29  ;;  %v1944_v30 = vld [vmem:[%s3182_s0 + $0x3f0] sm:$0xff]  ;;  %v2043_v31 = vld [vmem:[%s3182_s0 + $0x578] sm:$0xff] }
  0xbf   :  { %v1670_v37 = vmax.f32 %v1621_v35, 0.0  ;;  %1791 = vmatmul.msk.f32.gmra.mxu0 %vm65_vm1, %v39_v33  ;;  %1890 = vmatmul.msk.f32.gmra.mxu1 %vm65_vm1, %v1840_v34  ;;  %v44_v35 = vld [vmem:[%s3182_s0 + $0xe0] sm:$0xff] }
  0xc0   :  { %v1026_v38 = vpop.f32.mrf.mxu2  ;;  %v1436_v39 = vpop.f32.mrf.mxu3 }
  0xc1   :  { %1720 = vst.msk [vmem:[%s3184_s3 + $0x30] sm:$0xff] %vm1713_vm2, %v1670_v37  ;;  %v1159_v40 = vmax.f32 %v749_v36, %v1026_v38  ;;  %v1845_v36 = vld [vmem:[%s3182_s0 + $0x268] sm:$0xff] }
  0xc3   :  { %v1569_v43 = vmax.f32 %v1159_v40, %v1436_v39 }
  0xc4   :  { %v258_v44 = vpop.f32.mrf.mxu0  ;;  %v619_v45 = vpop.f32.mrf.mxu1 }
  0xc5   :  { %v1622_v48 = vadd.f32 %v2417_v12, %v1569_v43  ;;  %1990 = vmatmul.msk.f32.gmra.mxu2 %vm65_vm1, %v1940_v41  ;;  %v750_v49 = vmax.f32 %v258_v44, %v619_v45  ;;  %2089 = vmatmul.msk.f32.gmra.mxu3 %vm65_vm1, %v2039_v42  ;;  %v1945_v43 = vld [vmem:[%s3182_s0 + $0x3f8] sm:$0xff]  ;;  %v2044_v44 = vld [vmem:[%s3182_s0 + $0x580] sm:$0xff] }
  0xc7   :  { %v1671_v50 = vmax.f32 %v1622_v48, 0.0  ;;  %1792 = vmatmul.msk.f32.gmra.mxu0 %vm65_vm1, %v40_v46  ;;  %1891 = vmatmul.msk.f32.gmra.mxu1 %vm65_vm1, %v1841_v47  ;;  %v45_v48 = vld [vmem:[%s3182_s0 + $0xe8] sm:$0xff] }
  0xc8   :  { %v1029_v51 = vpop.f32.mrf.mxu2  ;;  %v1439_v52 = vpop.f32.mrf.mxu3 }
  0xc9   :  { %1721 = vst.msk [vmem:[%s3184_s3 + $0x38] sm:$0xff] %vm1713_vm2, %v1671_v50  ;;  %v1160_v53 = vmax.f32 %v750_v49, %v1029_v51  ;;  %v1846_v49 = vld [vmem:[%s3182_s0 + $0x270] sm:$0xff] }
  0xcb   :  { %v1570_v56 = vmax.f32 %v1160_v53, %v1439_v52 }
  0xcc   :  { %v261_v57 = vpop.f32.mrf.mxu0  ;;  %v622_v58 = vpop.f32.mrf.mxu1 }
  0xcd   :  { %v1623_v61 = vadd.f32 %v2417_v12, %v1570_v56  ;;  %1991 = vmatmul.msk.f32.gmra.mxu2 %vm65_vm1, %v1941_v54  ;;  %v751_v62 = vmax.f32 %v261_v57, %v622_v58  ;;  %2090 = vmatmul.msk.f32.gmra.mxu3 %vm65_vm1, %v2040_v55  ;;  %v1946_v56 = vld [vmem:[%s3182_s0 + $0x400] sm:$0xff]  ;;  %v2045_v57 = vld [vmem:[%s3182_s0 + $0x588] sm:$0xff] }
  0xcf   :  { %v1672_v63 = vmax.f32 %v1623_v61, 0.0  ;;  %1793 = vmatmul.msk.f32.gmra.mxu0 %vm65_vm1, %v41_v59  ;;  %1892 = vmatmul.msk.f32.gmra.mxu1 %vm65_vm1, %v1842_v60  ;;  %v46_v61 = vld [vmem:[%s3182_s0 + $0xf0] sm:$0xff] }
  0xd0   :  { %v1032_v0 = vpop.f32.mrf.mxu2  ;;  %v1442_v1 = vpop.f32.mrf.mxu3 }
  0xd1   :  { %1722 = vst.msk [vmem:[%s3184_s3 + $0x40] sm:$0xff] %vm1713_vm2, %v1672_v63  ;;  %v1161_v2 = vmax.f32 %v751_v62, %v1032_v0  ;;  %v1847_v62 = vld [vmem:[%s3182_s0 + $0x278] sm:$0xff] }
  0xd3   :  { %v1571_v5 = vmax.f32 %v1161_v2, %v1442_v1 }
  0xd4   :  { %v264_v6 = vpop.f32.mrf.mxu0  ;;  %v625_v7 = vpop.f32.mrf.mxu1 }
  0xd5   :  { %v1624_v10 = vadd.f32 %v2417_v12, %v1571_v5  ;;  %1992 = vmatmul.msk.f32.gmra.mxu2 %vm65_vm1, %v1942_v3  ;;  %v752_v11 = vmax.f32 %v264_v6, %v625_v7  ;;  %2091 = vmatmul.msk.f32.gmra.mxu3 %vm65_vm1, %v2041_v4  ;;  %v1947_v5 = vld [vmem:[%s3182_s0 + $0x408] sm:$0xff]  ;;  %v2046_v6 = vld [vmem:[%s3182_s0 + $0x590] sm:$0xff] }
  0xd7   :  { %v1673_v13 = vmax.f32 %v1624_v10, 0.0  ;;  %1794 = vmatmul.msk.f32.gmra.mxu0 %vm65_vm1, %v42_v8  ;;  %1893 = vmatmul.msk.f32.gmra.mxu1 %vm65_vm1, %v1843_v9  ;;  %v47_v10 = vld [vmem:[%s3182_s0 + $0xf8] sm:$0xff] }
  0xd8   :  { %v1035_v14 = vpop.f32.mrf.mxu2  ;;  %v1445_v15 = vpop.f32.mrf.mxu3 }
  0xd9   :  { %1723 = vst.msk [vmem:[%s3184_s3 + $0x48] sm:$0xff] %vm1713_vm2, %v1673_v13  ;;  %v1162_v16 = vmax.f32 %v752_v11, %v1035_v14  ;;  %v1848_v11 = vld [vmem:[%s3182_s0 + $0x280] sm:$0xff] }
  0xdb   :  { %v1572_v19 = vmax.f32 %v1162_v16, %v1445_v15 }
  0xdc   :  { %v267_v20 = vpop.f32.mrf.mxu0  ;;  %v628_v21 = vpop.f32.mrf.mxu1 }
  0xdd   :  { %v1625_v24 = vadd.f32 %v2417_v12, %v1572_v19  ;;  %1993 = vmatmul.msk.f32.gmra.mxu2 %vm65_vm1, %v1943_v17  ;;  %v753_v25 = vmax.f32 %v267_v20, %v628_v21  ;;  %2092 = vmatmul.msk.f32.gmra.mxu3 %vm65_vm1, %v2042_v18  ;;  %v1948_v19 = vld [vmem:[%s3182_s0 + $0x410] sm:$0xff]  ;;  %v2047_v20 = vld [vmem:[%s3182_s0 + $0x598] sm:$0xff] }
  0xdf   :  { %v1674_v26 = vmax.f32 %v1625_v24, 0.0  ;;  %1795 = vmatmul.msk.f32.gmra.mxu0 %vm65_vm1, %v43_v22  ;;  %1894 = vmatmul.msk.f32.gmra.mxu1 %vm65_vm1, %v1844_v23  ;;  %v48_v24 = vld [vmem:[%s3182_s0 + $0x100] sm:$0xff] }
  0xe0   :  { %v1038_v27 = vpop.f32.mrf.mxu2  ;;  %v1448_v28 = vpop.f32.mrf.mxu3 }
  0xe1   :  { %1724 = vst.msk [vmem:[%s3184_s3 + $0x50] sm:$0xff] %vm1713_vm2, %v1674_v26  ;;  %v1163_v29 = vmax.f32 %v753_v25, %v1038_v27  ;;  %v1849_v25 = vld [vmem:[%s3182_s0 + $0x288] sm:$0xff] }
  0xe3   :  { %v1573_v32 = vmax.f32 %v1163_v29, %v1448_v28 }
  0xe4   :  { %v270_v33 = vpop.f32.mrf.mxu0  ;;  %v631_v34 = vpop.f32.mrf.mxu1 }
  0xe5   :  { %v1626_v37 = vadd.f32 %v2417_v12, %v1573_v32  ;;  %1994 = vmatmul.msk.f32.gmra.mxu2 %vm65_vm1, %v1944_v30  ;;  %v754_v38 = vmax.f32 %v270_v33, %v631_v34  ;;  %2093 = vmatmul.msk.f32.gmra.mxu3 %vm65_vm1, %v2043_v31  ;;  %v1949_v32 = vld [vmem:[%s3182_s0 + $0x418] sm:$0xff]  ;;  %v2048_v33 = vld [vmem:[%s3182_s0 + $0x5a0] sm:$0xff] }
  0xe7   :  { %v1675_v39 = vmax.f32 %v1626_v37, 0.0  ;;  %1796 = vmatmul.msk.f32.gmra.mxu0 %vm65_vm1, %v44_v35  ;;  %1895 = vmatmul.msk.f32.gmra.mxu1 %vm65_vm1, %v1845_v36  ;;  %v49_v37 = vld [vmem:[%s3182_s0 + $0x108] sm:$0xff] }
  0xe8   :  { %v1041_v40 = vpop.f32.mrf.mxu2  ;;  %v1451_v41 = vpop.f32.mrf.mxu3 }
  0xe9   :  { %1725 = vst.msk [vmem:[%s3184_s3 + $0x58] sm:$0xff] %vm1713_vm2, %v1675_v39  ;;  %v1164_v42 = vmax.f32 %v754_v38, %v1041_v40  ;;  %v1850_v38 = vld [vmem:[%s3182_s0 + $0x290] sm:$0xff] }
  0xeb   :  { %v1574_v45 = vmax.f32 %v1164_v42, %v1451_v41 }
  0xec   :  { %v273_v46 = vpop.f32.mrf.mxu0  ;;  %v634_v47 = vpop.f32.mrf.mxu1 }
  0xed   :  { %v1627_v50 = vadd.f32 %v2417_v12, %v1574_v45  ;;  %1995 = vmatmul.msk.f32.gmra.mxu2 %vm65_vm1, %v1945_v43  ;;  %v755_v51 = vmax.f32 %v273_v46, %v634_v47  ;;  %2094 = vmatmul.msk.f32.gmra.mxu3 %vm65_vm1, %v2044_v44  ;;  %v1950_v45 = vld [vmem:[%s3182_s0 + $0x420] sm:$0xff]  ;;  %v2049_v46 = vld [vmem:[%s3182_s0 + $0x5a8] sm:$0xff] }
  0xef   :  { %v1676_v52 = vmax.f32 %v1627_v50, 0.0  ;;  %1797 = vmatmul.msk.f32.gmra.mxu0 %vm65_vm1, %v45_v48  ;;  %1896 = vmatmul.msk.f32.gmra.mxu1 %vm65_vm1, %v1846_v49  ;;  %v50_v50 = vld [vmem:[%s3182_s0 + $0x110] sm:$0xff] }
  0xf0   :  { %v1044_v53 = vpop.f32.mrf.mxu2  ;;  %v1454_v54 = vpop.f32.mrf.mxu3 }
  0xf1   :  { %1726 = vst.msk [vmem:[%s3184_s3 + $0x60] sm:$0xff] %vm1713_vm2, %v1676_v52  ;;  %v1165_v55 = vmax.f32 %v755_v51, %v1044_v53  ;;  %v1851_v51 = vld [vmem:[%s3182_s0 + $0x298] sm:$0xff] }
  0xf3   :  { %v1575_v58 = vmax.f32 %v1165_v55, %v1454_v54 }
  0xf4   :  { %v276_v59 = vpop.f32.mrf.mxu0  ;;  %v637_v60 = vpop.f32.mrf.mxu1 }
  0xf5   :  { %v1628_v63 = vadd.f32 %v2417_v12, %v1575_v58  ;;  %1996 = vmatmul.msk.f32.gmra.mxu2 %vm65_vm1, %v1946_v56  ;;  %v756_v0 = vmax.f32 %v276_v59, %v637_v60  ;;  %2095 = vmatmul.msk.f32.gmra.mxu3 %vm65_vm1, %v2045_v57  ;;  %v1951_v58 = vld [vmem:[%s3182_s0 + $0x428] sm:$0xff]  ;;  %v2050_v59 = vld [vmem:[%s3182_s0 + $0x5b0] sm:$0xff] }
  0xf7   :  { %v1677_v1 = vmax.f32 %v1628_v63, 0.0  ;;  %1798 = vmatmul.msk.f32.gmra.mxu0 %vm65_vm1, %v46_v61  ;;  %1897 = vmatmul.msk.f32.gmra.mxu1 %vm65_vm1, %v1847_v62  ;;  %v51_v63 = vld [vmem:[%s3182_s0 + $0x118] sm:$0xff] }
  0xf8   :  { %v1047_v2 = vpop.f32.mrf.mxu2  ;;  %v1457_v3 = vpop.f32.mrf.mxu3 }
  0xf9   :  { %1727 = vst.msk [vmem:[%s3184_s3 + $0x68] sm:$0xff] %vm1713_vm2, %v1677_v1  ;;  %v1166_v4 = vmax.f32 %v756_v0, %v1047_v2  ;;  %v1852_v0 = vld [vmem:[%s3182_s0 + $0x2a0] sm:$0xff] }
  0xfb   :  { %v1576_v7 = vmax.f32 %v1166_v4, %v1457_v3 }
  0xfc   :  { %v279_v8 = vpop.f32.mrf.mxu0  ;;  %v640_v9 = vpop.f32.mrf.mxu1 }
  0xfd   :  { %v1629_v13 = vadd.f32 %v2417_v12, %v1576_v7  ;;  %1997 = vmatmul.msk.f32.gmra.mxu2 %vm65_vm1, %v1947_v5  ;;  %v757_v14 = vmax.f32 %v279_v8, %v640_v9  ;;  %2096 = vmatmul.msk.f32.gmra.mxu3 %vm65_vm1, %v2046_v6  ;;  %v1952_v7 = vld [vmem:[%s3182_s0 + $0x430] sm:$0xff]  ;;  %v2051_v8 = vld [vmem:[%s3182_s0 + $0x5b8] sm:$0xff] }
  0xff   :  { %v1678_v15 = vmax.f32 %v1629_v13, 0.0  ;;  %1799 = vmatmul.msk.f32.gmra.mxu0 %vm65_vm1, %v47_v10  ;;  %1898 = vmatmul.msk.f32.gmra.mxu1 %vm65_vm1, %v1848_v11  ;;  %v52_v13 = vld [vmem:[%s3182_s0 + $0x120] sm:$0xff] }
 0x100   :  { %v1050_v16 = vpop.f32.mrf.mxu2  ;;  %v1460_v17 = vpop.f32.mrf.mxu3 }
 0x101   :  { %1728 = vst.msk [vmem:[%s3184_s3 + $0x70] sm:$0xff] %vm1713_vm2, %v1678_v15  ;;  %v1167_v18 = vmax.f32 %v757_v14, %v1050_v16  ;;  %v1853_v14 = vld [vmem:[%s3182_s0 + $0x2a8] sm:$0xff] }
 0x103   :  { %v1577_v21 = vmax.f32 %v1167_v18, %v1460_v17 }
 0x104   :  { %v282_v22 = vpop.f32.mrf.mxu0  ;;  %v643_v23 = vpop.f32.mrf.mxu1 }
 0x105   :  { %v1630_v26 = vadd.f32 %v2417_v12, %v1577_v21  ;;  %1998 = vmatmul.msk.f32.gmra.mxu2 %vm65_vm1, %v1948_v19  ;;  %v758_v27 = vmax.f32 %v282_v22, %v643_v23  ;;  %2097 = vmatmul.msk.f32.gmra.mxu3 %vm65_vm1, %v2047_v20  ;;  %v1953_v21 = vld [vmem:[%s3182_s0 + $0x438] sm:$0xff]  ;;  %v2052_v22 = vld [vmem:[%s3182_s0 + $0x5c0] sm:$0xff] }
 0x107   :  { %v1679_v28 = vmax.f32 %v1630_v26, 0.0  ;;  %1800 = vmatmul.msk.f32.gmra.mxu0 %vm65_vm1, %v48_v24  ;;  %1899 = vmatmul.msk.f32.gmra.mxu1 %vm65_vm1, %v1849_v25  ;;  %v53_v26 = vld [vmem:[%s3182_s0 + $0x128] sm:$0xff] }
 0x108   :  { %v1053_v29 = vpop.f32.mrf.mxu2  ;;  %v1463_v30 = vpop.f32.mrf.mxu3 }
 0x109   :  { %1729 = vst.msk [vmem:[%s3184_s3 + $0x78] sm:$0xff] %vm1713_vm2, %v1679_v28  ;;  %v1168_v31 = vmax.f32 %v758_v27, %v1053_v29  ;;  %v1854_v27 = vld [vmem:[%s3182_s0 + $0x2b0] sm:$0xff] }
 0x10b   :  { %v1578_v34 = vmax.f32 %v1168_v31, %v1463_v30 }
 0x10c   :  { %v285_v35 = vpop.f32.mrf.mxu0  ;;  %v646_v36 = vpop.f32.mrf.mxu1 }
 0x10d   :  { %v1631_v39 = vadd.f32 %v2417_v12, %v1578_v34  ;;  %1999 = vmatmul.msk.f32.gmra.mxu2 %vm65_vm1, %v1949_v32  ;;  %v759_v40 = vmax.f32 %v285_v35, %v646_v36  ;;  %2098 = vmatmul.msk.f32.gmra.mxu3 %vm65_vm1, %v2048_v33  ;;  %v1954_v34 = vld [vmem:[%s3182_s0 + $0x440] sm:$0xff]  ;;  %v2053_v35 = vld [vmem:[%s3182_s0 + $0x5c8] sm:$0xff] }
 0x10f   :  { %v1680_v41 = vmax.f32 %v1631_v39, 0.0  ;;  %1801 = vmatmul.msk.f32.gmra.mxu0 %vm65_vm1, %v49_v37  ;;  %1900 = vmatmul.msk.f32.gmra.mxu1 %vm65_vm1, %v1850_v38  ;;  %v54_v39 = vld [vmem:[%s3182_s0 + $0x130] sm:$0xff] }
 0x110   :  { %v1056_v42 = vpop.f32.mrf.mxu2  ;;  %v1466_v43 = vpop.f32.mrf.mxu3 }
 0x111   :  { %1730 = vst.msk [vmem:[%s3184_s3 + $0x80] sm:$0xff] %vm1713_vm2, %v1680_v41  ;;  %v1169_v44 = vmax.f32 %v759_v40, %v1056_v42  ;;  %v1855_v40 = vld [vmem:[%s3182_s0 + $0x2b8] sm:$0xff] }
 0x113   :  { %v1579_v47 = vmax.f32 %v1169_v44, %v1466_v43 }
 0x114   :  { %v288_v48 = vpop.f32.mrf.mxu0  ;;  %v649_v49 = vpop.f32.mrf.mxu1 }
 0x115   :  { %v1632_v52 = vadd.f32 %v2417_v12, %v1579_v47  ;;  %2000 = vmatmul.msk.f32.gmra.mxu2 %vm65_vm1, %v1950_v45  ;;  %v760_v53 = vmax.f32 %v288_v48, %v649_v49  ;;  %2099 = vmatmul.msk.f32.gmra.mxu3 %vm65_vm1, %v2049_v46  ;;  %v1955_v47 = vld [vmem:[%s3182_s0 + $0x448] sm:$0xff]  ;;  %v2054_v48 = vld [vmem:[%s3182_s0 + $0x5d0] sm:$0xff] }
 0x117   :  { %v1681_v54 = vmax.f32 %v1632_v52, 0.0  ;;  %1802 = vmatmul.msk.f32.gmra.mxu0 %vm65_vm1, %v50_v50  ;;  %1901 = vmatmul.msk.f32.gmra.mxu1 %vm65_vm1, %v1851_v51  ;;  %v55_v52 = vld [vmem:[%s3182_s0 + $0x138] sm:$0xff] }
 0x118   :  { %v1059_v55 = vpop.f32.mrf.mxu2  ;;  %v1469_v56 = vpop.f32.mrf.mxu3 }
 0x119   :  { %1731 = vst.msk [vmem:[%s3184_s3 + $0x88] sm:$0xff] %vm1713_vm2, %v1681_v54  ;;  %v1170_v57 = vmax.f32 %v760_v53, %v1059_v55  ;;  %v1856_v53 = vld [vmem:[%s3182_s0 + $0x2c0] sm:$0xff] }
 0x11b   :  { %v1580_v60 = vmax.f32 %v1170_v57, %v1469_v56 }
 0x11c   :  { %v291_v61 = vpop.f32.mrf.mxu0  ;;  %v652_v62 = vpop.f32.mrf.mxu1 }
 0x11d   :  { %v1633_v1 = vadd.f32 %v2417_v12, %v1580_v60  ;;  %2001 = vmatmul.msk.f32.gmra.mxu2 %vm65_vm1, %v1951_v58  ;;  %v761_v2 = vmax.f32 %v291_v61, %v652_v62  ;;  %2100 = vmatmul.msk.f32.gmra.mxu3 %vm65_vm1, %v2050_v59  ;;  %v1956_v60 = vld [vmem:[%s3182_s0 + $0x450] sm:$0xff]  ;;  %v2055_v61 = vld [vmem:[%s3182_s0 + $0x5d8] sm:$0xff] }
 0x11f   :  { %v1682_v3 = vmax.f32 %v1633_v1, 0.0  ;;  %1803 = vmatmul.msk.f32.gmra.mxu0 %vm65_vm1, %v51_v63  ;;  %1902 = vmatmul.msk.f32.gmra.mxu1 %vm65_vm1, %v1852_v0  ;;  %v56_v1 = vld [vmem:[%s3182_s0 + $0x140] sm:$0xff] }
 0x120   :  { %v1062_v4 = vpop.f32.mrf.mxu2  ;;  %v1472_v5 = vpop.f32.mrf.mxu3 }
 0x121   :  { %1732 = vst.msk [vmem:[%s3184_s3 + $0x90] sm:$0xff] %vm1713_vm2, %v1682_v3  ;;  %v1171_v6 = vmax.f32 %v761_v2, %v1062_v4  ;;  %v1857_v2 = vld [vmem:[%s3182_s0 + $0x2c8] sm:$0xff] }
 0x123   :  { %v1581_v9 = vmax.f32 %v1171_v6, %v1472_v5 }
 0x124   :  { %v294_v10 = vpop.f32.mrf.mxu0  ;;  %v655_v11 = vpop.f32.mrf.mxu1 }
 0x125   :  { %v1634_v15 = vadd.f32 %v2417_v12, %v1581_v9  ;;  %2002 = vmatmul.msk.f32.gmra.mxu2 %vm65_vm1, %v1952_v7  ;;  %v762_v16 = vmax.f32 %v294_v10, %v655_v11  ;;  %2101 = vmatmul.msk.f32.gmra.mxu3 %vm65_vm1, %v2051_v8  ;;  %v1957_v9 = vld [vmem:[%s3182_s0 + $0x458] sm:$0xff]  ;;  %v2056_v10 = vld [vmem:[%s3182_s0 + $0x5e0] sm:$0xff] }
 0x127   :  { %v1683_v17 = vmax.f32 %v1634_v15, 0.0  ;;  %1804 = vmatmul.msk.f32.gmra.mxu0 %vm65_vm1, %v52_v13  ;;  %1903 = vmatmul.msk.f32.gmra.mxu1 %vm65_vm1, %v1853_v14  ;;  %v57_v15 = vld [vmem:[%s3182_s0 + $0x148] sm:$0xff] }
 0x128   :  { %v1065_v18 = vpop.f32.mrf.mxu2  ;;  %v1475_v19 = vpop.f32.mrf.mxu3 }
 0x129   :  { %1733 = vst.msk [vmem:[%s3184_s3 + $0x98] sm:$0xff] %vm1713_vm2, %v1683_v17  ;;  %v1172_v20 = vmax.f32 %v762_v16, %v1065_v18  ;;  %v1858_v16 = vld [vmem:[%s3182_s0 + $0x2d0] sm:$0xff] }
 0x12b   :  { %v1582_v23 = vmax.f32 %v1172_v20, %v1475_v19 }
 0x12c   :  { %v297_v24 = vpop.f32.mrf.mxu0  ;;  %v658_v25 = vpop.f32.mrf.mxu1 }
 0x12d   :  { %v1635_v28 = vadd.f32 %v2417_v12, %v1582_v23  ;;  %2003 = vmatmul.msk.f32.gmra.mxu2 %vm65_vm1, %v1953_v21  ;;  %v763_v29 = vmax.f32 %v297_v24, %v658_v25  ;;  %2102 = vmatmul.msk.f32.gmra.mxu3 %vm65_vm1, %v2052_v22  ;;  %v1958_v23 = vld [vmem:[%s3182_s0 + $0x460] sm:$0xff]  ;;  %v2057_v24 = vld [vmem:[%s3182_s0 + $0x5e8] sm:$0xff] }
 0x12f   :  { %v1684_v30 = vmax.f32 %v1635_v28, 0.0  ;;  %1805 = vmatmul.msk.f32.gmra.mxu0 %vm65_vm1, %v53_v26  ;;  %1904 = vmatmul.msk.f32.gmra.mxu1 %vm65_vm1, %v1854_v27  ;;  %v58_v28 = vld [vmem:[%s3182_s0 + $0x150] sm:$0xff] }
 0x130   :  { %v1068_v31 = vpop.f32.mrf.mxu2  ;;  %v1478_v32 = vpop.f32.mrf.mxu3 }
 0x131   :  { %1734 = vst.msk [vmem:[%s3184_s3 + $0xa0] sm:$0xff] %vm1713_vm2, %v1684_v30  ;;  %v1173_v33 = vmax.f32 %v763_v29, %v1068_v31  ;;  %v1859_v29 = vld [vmem:[%s3182_s0 + $0x2d8] sm:$0xff] }
 0x133   :  { %v1583_v36 = vmax.f32 %v1173_v33, %v1478_v32 }
 0x134   :  { %v300_v37 = vpop.f32.mrf.mxu0  ;;  %v661_v38 = vpop.f32.mrf.mxu1 }
 0x135   :  { %v1636_v41 = vadd.f32 %v2417_v12, %v1583_v36  ;;  %2004 = vmatmul.msk.f32.gmra.mxu2 %vm65_vm1, %v1954_v34  ;;  %v764_v42 = vmax.f32 %v300_v37, %v661_v38  ;;  %2103 = vmatmul.msk.f32.gmra.mxu3 %vm65_vm1, %v2053_v35  ;;  %v1959_v36 = vld [vmem:[%s3182_s0 + $0x468] sm:$0xff]  ;;  %v2058_v37 = vld [vmem:[%s3182_s0 + $0x5f0] sm:$0xff] }
 0x137   :  { %v1685_v43 = vmax.f32 %v1636_v41, 0.0  ;;  %1806 = vmatmul.msk.f32.gmra.mxu0 %vm65_vm1, %v54_v39  ;;  %1905 = vmatmul.msk.f32.gmra.mxu1 %vm65_vm1, %v1855_v40  ;;  %v59_v41 = vld [vmem:[%s3182_s0 + $0x158] sm:$0xff] }
 0x138   :  { %v1071_v44 = vpop.f32.mrf.mxu2  ;;  %v1481_v45 = vpop.f32.mrf.mxu3 }
 0x139   :  { %1735 = vst.msk [vmem:[%s3184_s3 + $0xa8] sm:$0xff] %vm1713_vm2, %v1685_v43  ;;  %v1174_v46 = vmax.f32 %v764_v42, %v1071_v44  ;;  %v1860_v42 = vld [vmem:[%s3182_s0 + $0x2e0] sm:$0xff] }
 0x13b   :  { %v1584_v49 = vmax.f32 %v1174_v46, %v1481_v45 }
 0x13c   :  { %v303_v50 = vpop.f32.mrf.mxu0  ;;  %v664_v51 = vpop.f32.mrf.mxu1 }
 0x13d   :  { %v1637_v54 = vadd.f32 %v2417_v12, %v1584_v49  ;;  %2005 = vmatmul.msk.f32.gmra.mxu2 %vm65_vm1, %v1955_v47  ;;  %v765_v55 = vmax.f32 %v303_v50, %v664_v51  ;;  %2104 = vmatmul.msk.f32.gmra.mxu3 %vm65_vm1, %v2054_v48  ;;  %v1960_v49 = vld [vmem:[%s3182_s0 + $0x470] sm:$0xff]  ;;  %v2059_v50 = vld [vmem:[%s3182_s0 + $0x5f8] sm:$0xff] }
 0x13f   :  { %v1686_v56 = vmax.f32 %v1637_v54, 0.0  ;;  %1807 = vmatmul.msk.f32.gmra.mxu0 %vm65_vm1, %v55_v52  ;;  %1906 = vmatmul.msk.f32.gmra.mxu1 %vm65_vm1, %v1856_v53  ;;  %v60_v54 = vld [vmem:[%s3182_s0 + $0x160] sm:$0xff] }
 0x140   :  { %v1074_v57 = vpop.f32.mrf.mxu2  ;;  %v1484_v58 = vpop.f32.mrf.mxu3 }
 0x141   :  { %1736 = vst.msk [vmem:[%s3184_s3 + $0xb0] sm:$0xff] %vm1713_vm2, %v1686_v56  ;;  %v1175_v59 = vmax.f32 %v765_v55, %v1074_v57  ;;  %v1861_v55 = vld [vmem:[%s3182_s0 + $0x2e8] sm:$0xff] }
 0x143   :  { %v1585_v62 = vmax.f32 %v1175_v59, %v1484_v58 }
 0x144   :  { %v306_v63 = vpop.f32.mrf.mxu0  ;;  %v667_v0 = vpop.f32.mrf.mxu1 }
 0x145   :  { %v1638_v3 = vadd.f32 %v2417_v12, %v1585_v62  ;;  %2006 = vmatmul.msk.f32.gmra.mxu2 %vm65_vm1, %v1956_v60  ;;  %v766_v4 = vmax.f32 %v306_v63, %v667_v0  ;;  %2105 = vmatmul.msk.f32.gmra.mxu3 %vm65_vm1, %v2055_v61  ;;  %v2060_v62 = vld [vmem:[%s3182_s0 + $0x600] sm:$0xff] }
 0x147   :  { %v1687_v5 = vmax.f32 %v1638_v3, 0.0  ;;  %1808 = vmatmul.msk.f32.gmra.mxu0 %vm65_vm1, %v56_v1  ;;  %1907 = vmatmul.msk.f32.gmra.mxu1 %vm65_vm1, %v1857_v2  ;;  %v61_v2 = vld [vmem:[%s3182_s0 + $0x168] sm:$0xff]  ;;  %v1862_v3 = vld [vmem:[%s3182_s0 + $0x2f0] sm:$0xff] }
 0x148   :  { %v1077_v6 = vpop.f32.mrf.mxu2  ;;  %v1487_v7 = vpop.f32.mrf.mxu3 }
 0x149   :  { %1737 = vst.msk [vmem:[%s3184_s3 + $0xb8] sm:$0xff] %vm1713_vm2, %v1687_v5  ;;  %v1176_v8 = vmax.f32 %v766_v4, %v1077_v6  ;;  %v3022_v4 = vld [vmem:[%s3183_s2] ss:$0 sm:$0xff] }
 0x14b   :  { %v1586_v11 = vmax.f32 %v1176_v8, %v1487_v7 }
 0x14c   :  { %v309_v13 = vpop.f32.mrf.mxu0  ;;  %v670_v14 = vpop.f32.mrf.mxu1 }
 0x14d   :  { %v1639_v17 = vadd.f32 %v2417_v12, %v1586_v11  ;;  %2007 = vmatmul.msk.f32.gmra.mxu2 %vm65_vm1, %v1957_v9  ;;  %v767_v18 = vmax.f32 %v309_v13, %v670_v14  ;;  %2106 = vmatmul.msk.f32.gmra.mxu3 %vm65_vm1, %v2056_v10  ;;  %v1962_v11 = vld [vmem:[%s3182_s0 + $0x480] sm:$0xff]  ;;  %v2061_v13 = vld [vmem:[%s3182_s0 + $0x608] sm:$0xff] }
 0x14f   :  { %v1688_v19 = vmax.f32 %v1639_v17, 0.0  ;;  %1809 = vmatmul.msk.f32.gmra.mxu0 %vm65_vm1, %v57_v15  ;;  %1908 = vmatmul.msk.f32.gmra.mxu1 %vm65_vm1, %v1858_v16  ;;  %v62_v17 = vld [vmem:[%s3182_s0 + $0x170] sm:$0xff] }
 0x150   :  { %v1080_v20 = vpop.f32.mrf.mxu2  ;;  %v1490_v21 = vpop.f32.mrf.mxu3 }
 0x151   :  { %1738 = vst.msk [vmem:[%s3184_s3 + $0xc0] sm:$0xff] %vm1713_vm2, %v1688_v19  ;;  %v1177_v22 = vmax.f32 %v767_v18, %v1080_v20  ;;  %v1863_v18 = vld [vmem:[%s3182_s0 + $0x2f8] sm:$0xff] }
 0x153   :  { %v1587_v25 = vmax.f32 %v1177_v22, %v1490_v21 }
 0x154   :  { %v312_v26 = vpop.f32.mrf.mxu0  ;;  %v673_v27 = vpop.f32.mrf.mxu1 }
 0x155   :  { %v1640_v30 = vadd.f32 %v2417_v12, %v1587_v25  ;;  %2008 = vmatmul.msk.f32.gmra.mxu2 %vm65_vm1, %v1958_v23  ;;  %v768_v31 = vmax.f32 %v312_v26, %v673_v27  ;;  %2107 = vmatmul.msk.f32.gmra.mxu3 %vm65_vm1, %v2057_v24  ;;  %v1963_v25 = vld [vmem:[%s3182_s0 + $0x488] sm:$0xff]  ;;  %v2062_v26 = vld [vmem:[%s3182_s0 + $0x610] sm:$0xff] }
 0x157   :  { %v1689_v32 = vmax.f32 %v1640_v30, 0.0  ;;  %1810 = vmatmul.msk.f32.gmra.mxu0 %vm65_vm1, %v58_v28  ;;  %1909 = vmatmul.msk.f32.gmra.mxu1 %vm65_vm1, %v1859_v29  ;;  %v63_v30 = vld [vmem:[%s3182_s0 + $0x178] sm:$0xff] }
 0x158   :  { %v1083_v33 = vpop.f32.mrf.mxu2  ;;  %v1493_v34 = vpop.f32.mrf.mxu3 }
 0x159   :  { %1739 = vst.msk [vmem:[%s3184_s3 + $0xc8] sm:$0xff] %vm1713_vm2, %v1689_v32  ;;  %v1178_v35 = vmax.f32 %v768_v31, %v1083_v33  ;;  %v1864_v31 = vld [vmem:[%s3182_s0 + $0x300] sm:$0xff] }
 0x15b   :  { %v1588_v38 = vmax.f32 %v1178_v35, %v1493_v34 }
 0x15c   :  { %v315_v39 = vpop.f32.mrf.mxu0  ;;  %v676_v40 = vpop.f32.mrf.mxu1 }
 0x15d   :  { %v1641_v43 = vadd.f32 %v2417_v12, %v1588_v38  ;;  %2009 = vmatmul.msk.f32.gmra.mxu2 %vm65_vm1, %v1959_v36  ;;  %v769_v44 = vmax.f32 %v315_v39, %v676_v40  ;;  %2108 = vmatmul.msk.f32.gmra.mxu3 %vm65_vm1, %v2058_v37  ;;  %v1964_v38 = vld [vmem:[%s3182_s0 + $0x490] sm:$0xff]  ;;  %v2063_v39 = vld [vmem:[%s3182_s0 + $0x618] sm:$0xff] }
 0x15f   :  { %v1690_v45 = vmax.f32 %v1641_v43, 0.0  ;;  %1811 = vmatmul.msk.f32.gmra.mxu0 %vm65_vm1, %v59_v41  ;;  %1910 = vmatmul.msk.f32.gmra.mxu1 %vm65_vm1, %v1860_v42  ;;  %v64_v43 = vld [vmem:[%s3182_s0 + $0x180] sm:$0xff] }
 0x160   :  { %v1086_v46 = vpop.f32.mrf.mxu2  ;;  %v1496_v47 = vpop.f32.mrf.mxu3 }
 0x161   :  { %1740 = vst.msk [vmem:[%s3184_s3 + $0xd0] sm:$0xff] %vm1713_vm2, %v1690_v45  ;;  %v1179_v48 = vmax.f32 %v769_v44, %v1086_v46  ;;  %v1865_v44 = vld [vmem:[%s3182_s0 + $0x308] sm:$0xff] }
 0x163   :  { %v1589_v51 = vmax.f32 %v1179_v48, %v1496_v47 }
 0x164   :  { %v318_v52 = vpop.f32.mrf.mxu0  ;;  %v679_v53 = vpop.f32.mrf.mxu1 }
 0x165   :  { %v1642_v56 = vadd.f32 %v2417_v12, %v1589_v51  ;;  %2010 = vmatmul.msk.f32.gmra.mxu2 %vm65_vm1, %v1960_v49  ;;  %v770_v57 = vmax.f32 %v318_v52, %v679_v53  ;;  %2109 = vmatmul.msk.f32.gmra.mxu3 %vm65_vm1, %v2059_v50  ;;  %v1961_v12 = vld [vmem:[%s3182_s0 + $0x478] sm:$0xff] }
 0x167   :  { %v1691_v58 = vmax.f32 %v1642_v56, 0.0  ;;  %1812 = vmatmul.msk.f32.gmra.mxu0 %vm65_vm1, %v60_v54  ;;  %1911 = vmatmul.msk.f32.gmra.mxu1 %vm65_vm1, %v1861_v55 }
 0x168   :  { %v1089_v59 = vpop.f32.mrf.mxu2  ;;  %v1499_v60 = vpop.f32.mrf.mxu3 }
 0x169   :  { %1741 = vst.msk [vmem:[%s3184_s3 + $0xd8] sm:$0xff] %vm1713_vm2, %v1691_v58  ;;  %v1180_v61 = vmax.f32 %v770_v57, %v1089_v59 }
 0x16b   :  { %v1590_v63 = vmax.f32 %v1180_v61, %v1499_v60 }
 0x16c   :  { %v321_v0 = vpop.f32.mrf.mxu0  ;;  %v682_v1 = vpop.f32.mrf.mxu1 }
 0x16d   :  { %v1643_v5 = vadd.f32 %v3022_v4, %v1590_v63  ;;  %2011 = vmatmul.msk.f32.gmra.mxu2 %vm65_vm1, %v1961_v12  ;;  %v771_v6 = vmax.f32 %v321_v0, %v682_v1  ;;  %2110 = vmatmul.msk.f32.gmra.mxu3 %vm65_vm1, %v2060_v62 }
 0x16f   :  { %v1692_v7 = vmax.f32 %v1643_v5, 0.0  ;;  %1813 = vmatmul.msk.f32.gmra.mxu0 %vm65_vm1, %v61_v2  ;;  %1912 = vmatmul.msk.f32.gmra.mxu1 %vm65_vm1, %v1862_v3 }
 0x170   :  { %v1092_v8 = vpop.f32.mrf.mxu2  ;;  %v1502_v9 = vpop.f32.mrf.mxu3 }
 0x171   :  { %1742 = vst.msk [vmem:[%s3184_s3 + $0xe0] sm:$0xff] %vm1713_vm2, %v1692_v7  ;;  %v1181_v10 = vmax.f32 %v771_v6, %v1092_v8 }
 0x173   :  { %v1591_v14 = vmax.f32 %v1181_v10, %v1502_v9 }
 0x174   :  { %v324_v15 = vpop.f32.mrf.mxu0  ;;  %v685_v16 = vpop.f32.mrf.mxu1 }
 0x175   :  { %v1644_v19 = vadd.f32 %v3022_v4, %v1591_v14  ;;  %2012 = vmatmul.msk.f32.gmra.mxu2 %vm65_vm1, %v1962_v11  ;;  %v772_v20 = vmax.f32 %v324_v15, %v685_v16  ;;  %2111 = vmatmul.msk.f32.gmra.mxu3 %vm65_vm1, %v2061_v13 }
 0x177   :  { %v1693_v21 = vmax.f32 %v1644_v19, 0.0  ;;  %1814 = vmatmul.msk.f32.gmra.mxu0 %vm65_vm1, %v62_v17  ;;  %1913 = vmatmul.msk.f32.gmra.mxu1 %vm65_vm1, %v1863_v18 }
 0x178   :  { %v1095_v22 = vpop.f32.mrf.mxu2  ;;  %v1505_v23 = vpop.f32.mrf.mxu3 }
 0x179   :  { %1743 = vst.msk [vmem:[%s3184_s3 + $0xe8] sm:$0xff] %vm1713_vm2, %v1693_v21  ;;  %v1182_v24 = vmax.f32 %v772_v20, %v1095_v22 }
 0x17b   :  { %v1592_v27 = vmax.f32 %v1182_v24, %v1505_v23 }
 0x17c   :  { %v327_v28 = vpop.f32.mrf.mxu0  ;;  %v688_v29 = vpop.f32.mrf.mxu1 }
 0x17d   :  { %v1645_v32 = vadd.f32 %v3022_v4, %v1592_v27  ;;  %2013 = vmatmul.msk.f32.gmra.mxu2 %vm65_vm1, %v1963_v25  ;;  %v773_v33 = vmax.f32 %v327_v28, %v688_v29  ;;  %2112 = vmatmul.msk.f32.gmra.mxu3 %vm65_vm1, %v2062_v26 }
 0x17f   :  { %v1694_v34 = vmax.f32 %v1645_v32, 0.0  ;;  %1815 = vmatmul.msk.f32.gmra.mxu0 %vm65_vm1, %v63_v30  ;;  %1914 = vmatmul.msk.f32.gmra.mxu1 %vm65_vm1, %v1864_v31 }
 0x180   :  { %v1098_v35 = vpop.f32.mrf.mxu2  ;;  %v1508_v36 = vpop.f32.mrf.mxu3 }
 0x181   :  { %1744 = vst.msk [vmem:[%s3184_s3 + $0xf0] sm:$0xff] %vm1713_vm2, %v1694_v34  ;;  %v1183_v37 = vmax.f32 %v773_v33, %v1098_v35 }
 0x183   :  { %v1593_v40 = vmax.f32 %v1183_v37, %v1508_v36 }
 0x184   :  { %v330_v41 = vpop.f32.mrf.mxu0  ;;  %v691_v42 = vpop.f32.mrf.mxu1 }
 0x185   :  { %v1646_v45 = vadd.f32 %v3022_v4, %v1593_v40  ;;  %2014 = vmatmul.msk.f32.gmra.mxu2 %vm65_vm1, %v1964_v38  ;;  %v774_v46 = vmax.f32 %v330_v41, %v691_v42  ;;  %2113 = vmatmul.msk.f32.gmra.mxu3 %vm65_vm1, %v2063_v39 }
 0x187   :  { %v1695_v47 = vmax.f32 %v1646_v45, 0.0  ;;  %1816 = vmatmul.msk.f32.gmra.mxu0 %vm65_vm1, %v64_v43  ;;  %1915 = vmatmul.msk.f32.gmra.mxu1 %vm65_vm1, %v1865_v44 }
 0x188   :  { %v1101_v48 = vpop.f32.mrf.mxu2  ;;  %v1511_v49 = vpop.f32.mrf.mxu3 }
 0x189   :  { %1745 = vst.msk [vmem:[%s3184_s3 + $0xf8] sm:$0xff] %vm1713_vm2, %v1695_v47  ;;  %v1184_v50 = vmax.f32 %v774_v46, %v1101_v48 }
 0x18b   :  { %v1594_v51 = vmax.f32 %v1184_v50, %v1511_v49 }
 0x18c   :  { %v333_v52 = vpop.f32.mrf.mxu0  ;;  %v694_v53 = vpop.f32.mrf.mxu1 }
 0x18d   :  { %v1647_v54 = vadd.f32 %v3022_v4, %v1594_v51  ;;  %v775_v55 = vmax.f32 %v333_v52, %v694_v53 }
 0x18f   :  { %v1696_v56 = vmax.f32 %v1647_v54, 0.0 }
 0x190   :  { %v1104_v57 = vpop.f32.mrf.mxu2  ;;  %v1514_v58 = vpop.f32.mrf.mxu3 }
 0x191   :  { %1746 = vst.msk [vmem:[%s3184_s3 + $0x100] sm:$0xff] %vm1713_vm2, %v1696_v56  ;;  %v1185_v59 = vmax.f32 %v775_v55, %v1104_v57 }
 0x193   :  { %v1595_v60 = vmax.f32 %v1185_v59, %v1514_v58 }
 0x194   :  { %v336_v61 = vpop.f32.mrf.mxu0  ;;  %v697_v12 = vpop.f32.mrf.mxu1 }
 0x195   :  { %v1648_v62 = vadd.f32 %v3022_v4, %v1595_v60  ;;  %v776_v63 = vmax.f32 %v336_v61, %v697_v12 }
 0x197   :  { %v1697_v0 = vmax.f32 %v1648_v62, 0.0 }
 0x198   :  { %v1107_v1 = vpop.f32.mrf.mxu2  ;;  %v1517_v2 = vpop.f32.mrf.mxu3 }
 0x199   :  { %1747 = vst.msk [vmem:[%s3184_s3 + $0x108] sm:$0xff] %vm1713_vm2, %v1697_v0  ;;  %v1186_v3 = vmax.f32 %v776_v63, %v1107_v1 }
 0x19b   :  { %v1596_v5 = vmax.f32 %v1186_v3, %v1517_v2 }
 0x19c   :  { %v339_v6 = vpop.f32.mrf.mxu0  ;;  %v700_v7 = vpop.f32.mrf.mxu1 }
 0x19d   :  { %v1649_v8 = vadd.f32 %v3022_v4, %v1596_v5  ;;  %v777_v9 = vmax.f32 %v339_v6, %v700_v7 }
 0x19f   :  { %v1698_v10 = vmax.f32 %v1649_v8, 0.0 }
 0x1a0   :  { %v1110_v11 = vpop.f32.mrf.mxu2  ;;  %v1520_v13 = vpop.f32.mrf.mxu3 }
 0x1a1   :  { %1748 = vst.msk [vmem:[%s3184_s3 + $0x110] sm:$0xff] %vm1713_vm2, %v1698_v10  ;;  %v1187_v14 = vmax.f32 %v777_v9, %v1110_v11 }
 0x1a3   :  { %v1597_v15 = vmax.f32 %v1187_v14, %v1520_v13 }
 0x1a4   :  { %v342_v16 = vpop.f32.mrf.mxu0  ;;  %v703_v17 = vpop.f32.mrf.mxu1 }
 0x1a5   :  { %v1650_v18 = vadd.f32 %v3022_v4, %v1597_v15  ;;  %v778_v19 = vmax.f32 %v342_v16, %v703_v17 }
 0x1a7   :  { %v1699_v20 = vmax.f32 %v1650_v18, 0.0 }
 0x1a8   :  { %v1113_v21 = vpop.f32.mrf.mxu2  ;;  %v1523_v22 = vpop.f32.mrf.mxu3 }
 0x1a9   :  { %1749 = vst.msk [vmem:[%s3184_s3 + $0x118] sm:$0xff] %vm1713_vm2, %v1699_v20  ;;  %v1188_v23 = vmax.f32 %v778_v19, %v1113_v21 }
 0x1ab   :  { %v1598_v24 = vmax.f32 %v1188_v23, %v1523_v22 }
 0x1ac   :  { %v345_v25 = vpop.f32.mrf.mxu0  ;;  %v706_v26 = vpop.f32.mrf.mxu1 }
 0x1ad   :  { %v1651_v27 = vadd.f32 %v3022_v4, %v1598_v24  ;;  %v779_v28 = vmax.f32 %v345_v25, %v706_v26 }
 0x1af   :  { %v1700_v29 = vmax.f32 %v1651_v27, 0.0 }
 0x1b0   :  { %v1116_v30 = vpop.f32.mrf.mxu2  ;;  %v1526_v31 = vpop.f32.mrf.mxu3 }
 0x1b1   :  { %1750 = vst.msk [vmem:[%s3184_s3 + $0x120] sm:$0xff] %vm1713_vm2, %v1700_v29  ;;  %v1189_v32 = vmax.f32 %v779_v28, %v1116_v30 }
 0x1b3   :  { %v1599_v33 = vmax.f32 %v1189_v32, %v1526_v31 }
 0x1b4   :  { %v348_v34 = vpop.f32.mrf.mxu0  ;;  %v709_v35 = vpop.f32.mrf.mxu1 }
 0x1b5   :  { %v1652_v36 = vadd.f32 %v3022_v4, %v1599_v33  ;;  %v780_v37 = vmax.f32 %v348_v34, %v709_v35 }
 0x1b7   :  { %v1701_v38 = vmax.f32 %v1652_v36, 0.0 }
 0x1b8   :  { %v1119_v39 = vpop.f32.mrf.mxu2  ;;  %v1529_v40 = vpop.f32.mrf.mxu3 }
 0x1b9   :  { %1751 = vst.msk [vmem:[%s3184_s3 + $0x128] sm:$0xff] %vm1713_vm2, %v1701_v38  ;;  %v1190_v41 = vmax.f32 %v780_v37, %v1119_v39 }
 0x1bb   :  { %v1600_v42 = vmax.f32 %v1190_v41, %v1529_v40 }
 0x1bc   :  { %v351_v43 = vpop.f32.mrf.mxu0  ;;  %v712_v44 = vpop.f32.mrf.mxu1 }
 0x1bd   :  { %v1653_v45 = vadd.f32 %v3022_v4, %v1600_v42  ;;  %v781_v46 = vmax.f32 %v351_v43, %v712_v44 }
 0x1bf   :  { %v1702_v47 = vmax.f32 %v1653_v45, 0.0 }
 0x1c0   :  { %v1122_v48 = vpop.f32.mrf.mxu2  ;;  %v1532_v49 = vpop.f32.mrf.mxu3 }
 0x1c1   :  { %1752 = vst.msk [vmem:[%s3184_s3 + $0x130] sm:$0xff] %vm1713_vm2, %v1702_v47  ;;  %v1191_v50 = vmax.f32 %v781_v46, %v1122_v48 }
 0x1c3   :  { %v1601_v51 = vmax.f32 %v1191_v50, %v1532_v49 }
 0x1c4   :  { %v354_v52 = vpop.f32.mrf.mxu0  ;;  %v715_v53 = vpop.f32.mrf.mxu1 }
 0x1c5   :  { %v1654_v54 = vadd.f32 %v3022_v4, %v1601_v51  ;;  %v782_v55 = vmax.f32 %v354_v52, %v715_v53 }
 0x1c7   :  { %v1703_v56 = vmax.f32 %v1654_v54, 0.0 }
 0x1c8   :  { %v1125_v57 = vpop.f32.mrf.mxu2  ;;  %v1535_v58 = vpop.f32.mrf.mxu3 }
 0x1c9   :  { %1753 = vst.msk [vmem:[%s3184_s3 + $0x138] sm:$0xff] %vm1713_vm2, %v1703_v56  ;;  %v1192_v59 = vmax.f32 %v782_v55, %v1125_v57 }
 0x1cb   :  { %v1602_v60 = vmax.f32 %v1192_v59, %v1535_v58 }
 0x1cc   :  { %v357_v61 = vpop.f32.mrf.mxu0  ;;  %v718_v12 = vpop.f32.mrf.mxu1 }
 0x1cd   :  { %v1655_v62 = vadd.f32 %v3022_v4, %v1602_v60  ;;  %v783_v63 = vmax.f32 %v357_v61, %v718_v12 }
 0x1cf   :  { %v1704_v0 = vmax.f32 %v1655_v62, 0.0 }
 0x1d0   :  { %v1128_v1 = vpop.f32.mrf.mxu2  ;;  %v1538_v2 = vpop.f32.mrf.mxu3 }
 0x1d1   :  { %1754 = vst.msk [vmem:[%s3184_s3 + $0x140] sm:$0xff] %vm1713_vm2, %v1704_v0  ;;  %v1193_v3 = vmax.f32 %v783_v63, %v1128_v1 }
 0x1d3   :  { %v1603_v5 = vmax.f32 %v1193_v3, %v1538_v2 }
 0x1d4   :  { %v360_v6 = vpop.f32.mrf.mxu0  ;;  %v721_v7 = vpop.f32.mrf.mxu1 }
 0x1d5   :  { %v1656_v8 = vadd.f32 %v3022_v4, %v1603_v5  ;;  %v784_v9 = vmax.f32 %v360_v6, %v721_v7 }
 0x1d7   :  { %v1705_v10 = vmax.f32 %v1656_v8, 0.0 }
 0x1d8   :  { %v1131_v11 = vpop.f32.mrf.mxu2  ;;  %v1541_v13 = vpop.f32.mrf.mxu3 }
 0x1d9   :  { %1755 = vst.msk [vmem:[%s3184_s3 + $0x148] sm:$0xff] %vm1713_vm2, %v1705_v10  ;;  %v1194_v14 = vmax.f32 %v784_v9, %v1131_v11 }
 0x1db   :  { %v1604_v15 = vmax.f32 %v1194_v14, %v1541_v13 }
 0x1dc   :  { %v363_v16 = vpop.f32.mrf.mxu0  ;;  %v724_v17 = vpop.f32.mrf.mxu1 }
 0x1dd   :  { %v1657_v18 = vadd.f32 %v3022_v4, %v1604_v15  ;;  %v785_v19 = vmax.f32 %v363_v16, %v724_v17 }
 0x1df   :  { %v1706_v20 = vmax.f32 %v1657_v18, 0.0 }
 0x1e0   :  { %v1134_v21 = vpop.f32.mrf.mxu2  ;;  %v1544_v22 = vpop.f32.mrf.mxu3 }
 0x1e1   :  { %1756 = vst.msk [vmem:[%s3184_s3 + $0x150] sm:$0xff] %vm1713_vm2, %v1706_v20  ;;  %v1195_v23 = vmax.f32 %v785_v19, %v1134_v21 }
 0x1e3   :  { %v1605_v24 = vmax.f32 %v1195_v23, %v1544_v22 }
 0x1e4   :  { %v366_v25 = vpop.f32.mrf.mxu0  ;;  %v727_v26 = vpop.f32.mrf.mxu1 }
 0x1e5   :  { %v1658_v27 = vadd.f32 %v3022_v4, %v1605_v24  ;;  %v786_v28 = vmax.f32 %v366_v25, %v727_v26 }
 0x1e7   :  { %v1707_v29 = vmax.f32 %v1658_v27, 0.0 }
 0x1e8   :  { %v1137_v30 = vpop.f32.mrf.mxu2  ;;  %v1547_v31 = vpop.f32.mrf.mxu3 }
 0x1e9   :  { %1757 = vst.msk [vmem:[%s3184_s3 + $0x158] sm:$0xff] %vm1713_vm2, %v1707_v29  ;;  %v1196_v32 = vmax.f32 %v786_v28, %v1137_v30 }
 0x1eb   :  { %v1606_v33 = vmax.f32 %v1196_v32, %v1547_v31 }
 0x1ec   :  { %v369_v34 = vpop.f32.mrf.mxu0  ;;  %v730_v35 = vpop.f32.mrf.mxu1 }
 0x1ed   :  { %v1659_v36 = vadd.f32 %v3022_v4, %v1606_v33  ;;  %v787_v37 = vmax.f32 %v369_v34, %v730_v35 }
 0x1ef   :  { %v1708_v38 = vmax.f32 %v1659_v36, 0.0 }
 0x1f0   :  { %v1140_v39 = vpop.f32.mrf.mxu2  ;;  %v1550_v40 = vpop.f32.mrf.mxu3 }
 0x1f1   :  { %1758 = vst.msk [vmem:[%s3184_s3 + $0x160] sm:$0xff] %vm1713_vm2, %v1708_v38  ;;  %v1197_v41 = vmax.f32 %v787_v37, %v1140_v39 }
 0x1f3   :  { %v1607_v42 = vmax.f32 %v1197_v41, %v1550_v40 }
 0x1f4   :  { %v372_v43 = vpop.f32.mrf.mxu0  ;;  %v733_v44 = vpop.f32.mrf.mxu1 }
 0x1f5   :  { %v1660_v45 = vadd.f32 %v3022_v4, %v1607_v42  ;;  %v788_v46 = vmax.f32 %v372_v43, %v733_v44 }
 0x1f7   :  { %v1709_v47 = vmax.f32 %v1660_v45, 0.0 }
 0x1f8   :  { %v1143_v48 = vpop.f32.mrf.mxu2  ;;  %v1553_v49 = vpop.f32.mrf.mxu3 }
 0x1f9   :  { %1759 = vst.msk [vmem:[%s3184_s3 + $0x168] sm:$0xff] %vm1713_vm2, %v1709_v47  ;;  %v1198_v50 = vmax.f32 %v788_v46, %v1143_v48 }
 0x1fb   :  { %v1608_v51 = vmax.f32 %v1198_v50, %v1553_v49 }
 0x1fc   :  { %v375_v52 = vpop.f32.mrf.mxu0  ;;  %v736_v53 = vpop.f32.mrf.mxu1 }
 0x1fd   :  { %v1661_v54 = vadd.f32 %v3022_v4, %v1608_v51  ;;  %v789_v55 = vmax.f32 %v375_v52, %v736_v53 }
 0x1ff   :  { %v1710_v56 = vmax.f32 %v1661_v54, 0.0 }
 0x200   :  { %v1146_v57 = vpop.f32.mrf.mxu2  ;;  %v1556_v58 = vpop.f32.mrf.mxu3 }
 0x201   :  { %1760 = vst.msk [vmem:[%s3184_s3 + $0x170] sm:$0xff] %vm1713_vm2, %v1710_v56  ;;  %v1199_v59 = vmax.f32 %v789_v55, %v1146_v57 }
 0x203   :  { %v1609_v60 = vmax.f32 %v1199_v59, %v1556_v58 }
 0x204   :  { %v378_v61 = vpop.f32.mrf.mxu0  ;;  %v739_v12 = vpop.f32.mrf.mxu1 }
 0x205   :  { %v1662_v62 = vadd.f32 %v3022_v4, %v1609_v60  ;;  %v790_v63 = vmax.f32 %v378_v61, %v739_v12 }
 0x207   :  { %v1711_v0 = vmax.f32 %v1662_v62, 0.0 }
 0x208   :  { %v1149_v1 = vpop.f32.mrf.mxu2  ;;  %v1559_v2 = vpop.f32.mrf.mxu3 }
 0x209   :  { %1761 = vst.msk [vmem:[%s3184_s3 + $0x178] sm:$0xff] %vm1713_vm2, %v1711_v0  ;;  %v1200_v3 = vmax.f32 %v790_v63, %v1149_v1 }
 0x20b   :  { %v1610_v5 = vmax.f32 %v1200_v3, %v1559_v2 }
 0x20d   :  { %v1663_v6 = vadd.f32 %v3022_v4, %v1610_v5 }
 0x20f   :  { %v1712_v7 = vmax.f32 %v1663_v6, 0.0 }
 0x211   :  { %1762 = vst.msk [vmem:[%s3184_s3 + $0x180] sm:$0xff] %vm1713_vm2, %v1712_v7 }

// kernel: cnn_forward.4
= control target key start
LH: loop header
LB: loop body
LE: loop exit
PB: predicated region body
PF: predicated region fallthrough
CT: control target
= control target key end

     0   :  { %vm36_vm0 = vcmask 588800   ;;  %vm528_vm1 = vcmask 130048   ;;  %s963_s1 = inlined_call_operand.vmem [shape: f32[72,16], index: 1, kind: input, shape index: {}]   ;;  %s964_s0 = inlined_call_operand.vmem [shape: f32[4,104,72], index: 0, kind: input, shape index: {}]   ;;  %s965_s2 = inlined_call_operand.vmem [shape: f32[1,16], index: 2, kind: input, shape index: {}]   ;;  %s966_s3 = inlined_call_operand.vmem [shape: f32[104,16], index: 3, kind: output, shape index: {}]  }
   0x1   :  { %v22_v0 = vld [vmem:[%s963_s1 + $0x40] sm:$0xff]  ;;  %v21_v1 = vld [vmem:[%s963_s1 + $0x38] sm:$0xff]  ;;  %v20_v2 = vld [vmem:[%s963_s1 + $0x30] sm:$0xff] }
   0x2   :  { %314 = vmatpush.msra.mxu2 %v22_v0  ;;  %436 = vmatpush.msra.mxu3 %v22_v0  ;;  %v19_v3 = vld [vmem:[%s963_s1 + $0x28] sm:$0xff]  ;;  %v18_v4 = vld [vmem:[%s963_s1 + $0x20] sm:$0xff]  ;;  %v17_v5 = vld [vmem:[%s963_s1 + $0x18] sm:$0xff] }
   0x3   :  { %83 = vmatpush.msra.mxu0 %v22_v0  ;;  %192 = vmatpush.msra.mxu1 %v22_v0  ;;  %v16_v6 = vld [vmem:[%s963_s1 + $0x10] sm:$0xff]  ;;  %v15_v7 = vld [vmem:[%s963_s1 + $0x8] sm:$0xff]  ;;  %v14_v8 = vld [vmem:[%s963_s1] sm:$0xff] }
   0x4   :  { %315 = vmatpush.msra.mxu2 %v21_v1  ;;  %437 = vmatpush.msra.mxu3 %v21_v1  ;;  %v585_v9 = vld [vmem:[%s964_s0 + $0xd0] sm:$0xff]  ;;  %v611_v10 = vld [vmem:[%s964_s0 + $0x138] sm:$0xff]  ;;  %v23_v11 = vld [vmem:[%s964_s0] sm:$0xff] }
   0x5   :  { %84 = vmatpush.msra.mxu0 %v21_v1  ;;  %193 = vmatpush.msra.mxu1 %v21_v1  ;;  %v559_v12 = vld [vmem:[%s964_s0 + $0x68] sm:$0xff]  ;;  %v586_v13 = vld [vmem:[%s964_s0 + $0xd8] sm:$0xff]  ;;  %v612_v14 = vld [vmem:[%s964_s0 + $0x140] sm:$0xff] }
   0x6   :  { %316 = vmatpush.msra.mxu2 %v20_v2  ;;  %438 = vmatpush.msra.mxu3 %v20_v2  ;;  %v24_v15 = vld [vmem:[%s964_s0 + $0x8] sm:$0xff]  ;;  %v560_v16 = vld [vmem:[%s964_s0 + $0x70] sm:$0xff]  ;;  %v587_v17 = vld [vmem:[%s964_s0 + $0xe0] sm:$0xff] }
   0x7   :  { %85 = vmatpush.msra.mxu0 %v20_v2  ;;  %194 = vmatpush.msra.mxu1 %v20_v2  ;;  %v613_v18 = vld [vmem:[%s964_s0 + $0x148] sm:$0xff]  ;;  %v25_v19 = vld [vmem:[%s964_s0 + $0x10] sm:$0xff]  ;;  %v561_v20 = vld [vmem:[%s964_s0 + $0x78] sm:$0xff] }
   0x8   :  { %317 = vmatpush.msra.mxu2 %v19_v3  ;;  %439 = vmatpush.msra.mxu3 %v19_v3  ;;  %v588_v21 = vld [vmem:[%s964_s0 + $0xe8] sm:$0xff]  ;;  %v614_v22 = vld [vmem:[%s964_s0 + $0x150] sm:$0xff]  ;;  %v26_v23 = vld [vmem:[%s964_s0 + $0x18] sm:$0xff] }
   0x9   :  { %86 = vmatpush.msra.mxu0 %v19_v3  ;;  %195 = vmatpush.msra.mxu1 %v19_v3  ;;  %v562_v24 = vld [vmem:[%s964_s0 + $0x80] sm:$0xff]  ;;  %v589_v25 = vld [vmem:[%s964_s0 + $0xf0] sm:$0xff]  ;;  %v615_v26 = vld [vmem:[%s964_s0 + $0x158] sm:$0xff] }
   0xa   :  { %318 = vmatpush.msra.mxu2 %v18_v4  ;;  %440 = vmatpush.msra.mxu3 %v18_v4  ;;  %v27_v27 = vld [vmem:[%s964_s0 + $0x20] sm:$0xff]  ;;  %v563_v28 = vld [vmem:[%s964_s0 + $0x88] sm:$0xff]  ;;  %v590_v29 = vld [vmem:[%s964_s0 + $0xf8] sm:$0xff] }
   0xb   :  { %87 = vmatpush.msra.mxu0 %v18_v4  ;;  %196 = vmatpush.msra.mxu1 %v18_v4  ;;  %v616_v30 = vld [vmem:[%s964_s0 + $0x160] sm:$0xff]  ;;  %v28_v31 = vld [vmem:[%s964_s0 + $0x28] sm:$0xff]  ;;  %v564_v32 = vld [vmem:[%s964_s0 + $0x90] sm:$0xff] }
   0xc   :  { %319 = vmatpush.msra.mxu2 %v17_v5  ;;  %441 = vmatpush.msra.mxu3 %v17_v5  ;;  %v591_v33 = vld [vmem:[%s964_s0 + $0x100] sm:$0xff]  ;;  %v617_v34 = vld [vmem:[%s964_s0 + $0x168] sm:$0xff]  ;;  %v29_v35 = vld [vmem:[%s964_s0 + $0x30] sm:$0xff] }
   0xd   :  { %88 = vmatpush.msra.mxu0 %v17_v5  ;;  %197 = vmatpush.msra.mxu1 %v17_v5  ;;  %v565_v36 = vld [vmem:[%s964_s0 + $0x98] sm:$0xff]  ;;  %v592_v37 = vld [vmem:[%s964_s0 + $0x108] sm:$0xff]  ;;  %v618_v38 = vld [vmem:[%s964_s0 + $0x170] sm:$0xff] }
   0xe   :  { %320 = vmatpush.msra.mxu2 %v16_v6  ;;  %442 = vmatpush.msra.mxu3 %v16_v6  ;;  %v30_v39 = vld [vmem:[%s964_s0 + $0x38] sm:$0xff]  ;;  %v566_v40 = vld [vmem:[%s964_s0 + $0xa0] sm:$0xff]  ;;  %v593_v41 = vld [vmem:[%s964_s0 + $0x110] sm:$0xff] }
   0xf   :  { %89 = vmatpush.msra.mxu0 %v16_v6  ;;  %198 = vmatpush.msra.mxu1 %v16_v6  ;;  %v619_v42 = vld [vmem:[%s964_s0 + $0x178] sm:$0xff]  ;;  %v31_v43 = vld [vmem:[%s964_s0 + $0x40] sm:$0xff]  ;;  %v567_v44 = vld [vmem:[%s964_s0 + $0xa8] sm:$0xff] }
  0x10   :  { %321 = vmatpush.msra.mxu2 %v15_v7  ;;  %443 = vmatpush.msra.mxu3 %v15_v7  ;;  %v594_v45 = vld [vmem:[%s964_s0 + $0x118] sm:$0xff]  ;;  %v620_v46 = vld [vmem:[%s964_s0 + $0x180] sm:$0xff]  ;;  %v32_v47 = vld [vmem:[%s964_s0 + $0x48] sm:$0xff] }
  0x11   :  { %90 = vmatpush.msra.mxu0 %v15_v7  ;;  %199 = vmatpush.msra.mxu1 %v15_v7  ;;  %v568_v48 = vld [vmem:[%s964_s0 + $0xb0] sm:$0xff]  ;;  %v595_v49 = vld [vmem:[%s964_s0 + $0x120] sm:$0xff]  ;;  %v621_v50 = vld [vmem:[%s964_s0 + $0x188] sm:$0xff] }
  0x12   :  { %322 = vmatpush.msra.mxu2 %v14_v8  ;;  %444 = vmatpush.msra.mxu3 %v14_v8  ;;  %v33_v51 = vld [vmem:[%s964_s0 + $0x50] sm:$0xff]  ;;  %v569_v52 = vld [vmem:[%s964_s0 + $0xb8] sm:$0xff]  ;;  %v596_v53 = vld [vmem:[%s964_s0 + $0x128] sm:$0xff] }
  0x13   :  { %598 = vmatmul.msk.f32.vlgmr.msra.gmra.mxu2 %vm36_vm0, %v585_v9  ;;  %624 = vmatmul.msk.f32.vlgmr.msra.gmra.mxu3 %vm36_vm0, %v611_v10  ;;  %v622_v54 = vld [vmem:[%s964_s0 + $0x190] sm:$0xff]  ;;  %v34_v55 = vld [vmem:[%s964_s0 + $0x58] sm:$0xff]  ;;  %v570_v56 = vld [vmem:[%s964_s0 + $0xc0] sm:$0xff] }
  0x14   :  { %91 = vmatpush.msra.mxu0 %v14_v8  ;;  %200 = vmatpush.msra.mxu1 %v14_v8  ;;  %v597_v57 = vld [vmem:[%s964_s0 + $0x130] sm:$0xff]  ;;  %v623_v58 = vld [vmem:[%s964_s0 + $0x198] sm:$0xff]  ;;  %v35_v59 = vld [vmem:[%s964_s0 + $0x60] sm:$0xff] }
  0x15   :  { %546 = vmatmul.msk.f32.vlgmr.msra.gmra.mxu0 %vm36_vm0, %v23_v11  ;;  %572 = vmatmul.msk.f32.vlgmr.msra.gmra.mxu1 %vm36_vm0, %v559_v12  ;;  %v571_v60 = vld [vmem:[%s964_s0 + $0xc8] sm:$0xff]  ;;  %v896_v3 = vld [vmem:[%s965_s2] ss:$0 sm:$0xff] }
  0x1b   :  { %599 = vmatmul.msk.f32.gmra.mxu2 %vm36_vm0, %v586_v13  ;;  %625 = vmatmul.msk.f32.gmra.mxu3 %vm36_vm0, %v612_v14 }
  0x1d   :  { %547 = vmatmul.msk.f32.gmra.mxu0 %vm36_vm0, %v24_v15  ;;  %573 = vmatmul.msk.f32.gmra.mxu1 %vm36_vm0, %v560_v16 }
  0x23   :  { %600 = vmatmul.msk.f32.gmra.mxu2 %vm36_vm0, %v587_v17  ;;  %626 = vmatmul.msk.f32.gmra.mxu3 %vm36_vm0, %v613_v18 }
  0x25   :  { %548 = vmatmul.msk.f32.gmra.mxu0 %vm36_vm0, %v25_v19  ;;  %574 = vmatmul.msk.f32.gmra.mxu1 %vm36_vm0, %v561_v20 }
  0x2b   :  { %601 = vmatmul.msk.f32.gmra.mxu2 %vm36_vm0, %v588_v21  ;;  %627 = vmatmul.msk.f32.gmra.mxu3 %vm36_vm0, %v614_v22 }
  0x2d   :  { %549 = vmatmul.msk.f32.gmra.mxu0 %vm36_vm0, %v26_v23  ;;  %575 = vmatmul.msk.f32.gmra.mxu1 %vm36_vm0, %v562_v24 }
  0x33   :  { %602 = vmatmul.msk.f32.gmra.mxu2 %vm36_vm0, %v589_v25  ;;  %628 = vmatmul.msk.f32.gmra.mxu3 %vm36_vm0, %v615_v26 }
  0x35   :  { %550 = vmatmul.msk.f32.gmra.mxu0 %vm36_vm0, %v27_v27  ;;  %576 = vmatmul.msk.f32.gmra.mxu1 %vm36_vm0, %v563_v28 }
  0x3b   :  { %603 = vmatmul.msk.f32.gmra.mxu2 %vm36_vm0, %v590_v29  ;;  %629 = vmatmul.msk.f32.gmra.mxu3 %vm36_vm0, %v616_v30 }
  0x3d   :  { %551 = vmatmul.msk.f32.gmra.mxu0 %vm36_vm0, %v28_v31  ;;  %577 = vmatmul.msk.f32.gmra.mxu1 %vm36_vm0, %v564_v32 }
  0x43   :  { %604 = vmatmul.msk.f32.gmra.mxu2 %vm36_vm0, %v591_v33  ;;  %630 = vmatmul.msk.f32.gmra.mxu3 %vm36_vm0, %v617_v34 }
  0x45   :  { %552 = vmatmul.msk.f32.gmra.mxu0 %vm36_vm0, %v29_v35  ;;  %578 = vmatmul.msk.f32.gmra.mxu1 %vm36_vm0, %v565_v36 }
  0x4b   :  { %605 = vmatmul.msk.f32.gmra.mxu2 %vm36_vm0, %v592_v37  ;;  %631 = vmatmul.msk.f32.gmra.mxu3 %vm36_vm0, %v618_v38 }
  0x4d   :  { %553 = vmatmul.msk.f32.gmra.mxu0 %vm36_vm0, %v30_v39  ;;  %579 = vmatmul.msk.f32.gmra.mxu1 %vm36_vm0, %v566_v40 }
  0x53   :  { %606 = vmatmul.msk.f32.gmra.mxu2 %vm36_vm0, %v593_v41  ;;  %632 = vmatmul.msk.f32.gmra.mxu3 %vm36_vm0, %v619_v42 }
  0x55   :  { %554 = vmatmul.msk.f32.gmra.mxu0 %vm36_vm0, %v31_v43  ;;  %580 = vmatmul.msk.f32.gmra.mxu1 %vm36_vm0, %v567_v44 }
  0x5b   :  { %607 = vmatmul.msk.f32.gmra.mxu2 %vm36_vm0, %v594_v45  ;;  %633 = vmatmul.msk.f32.gmra.mxu3 %vm36_vm0, %v620_v46 }
  0x5d   :  { %555 = vmatmul.msk.f32.gmra.mxu0 %vm36_vm0, %v32_v47  ;;  %581 = vmatmul.msk.f32.gmra.mxu1 %vm36_vm0, %v568_v48 }
  0x63   :  { %608 = vmatmul.msk.f32.gmra.mxu2 %vm36_vm0, %v595_v49  ;;  %634 = vmatmul.msk.f32.gmra.mxu3 %vm36_vm0, %v621_v50 }
  0x65   :  { %556 = vmatmul.msk.f32.gmra.mxu0 %vm36_vm0, %v33_v51  ;;  %582 = vmatmul.msk.f32.gmra.mxu1 %vm36_vm0, %v569_v52 }
  0x6b   :  { %609 = vmatmul.msk.f32.gmra.mxu2 %vm36_vm0, %v596_v53  ;;  %635 = vmatmul.msk.f32.gmra.mxu3 %vm36_vm0, %v622_v54 }
  0x6d   :  { %557 = vmatmul.msk.f32.gmra.mxu0 %vm36_vm0, %v34_v55  ;;  %583 = vmatmul.msk.f32.gmra.mxu1 %vm36_vm0, %v570_v56 }
  0x73   :  { %610 = vmatmul.msk.f32.gmra.mxu2 %vm36_vm0, %v597_v57  ;;  %636 = vmatmul.msk.f32.gmra.mxu3 %vm36_vm0, %v623_v58 }
  0x75   :  { %558 = vmatmul.msk.f32.gmra.mxu0 %vm36_vm0, %v35_v59  ;;  %584 = vmatmul.msk.f32.gmra.mxu1 %vm36_vm0, %v571_v60 }
  0x92   :  { %v93_v61 = vpop.f32.mrf.mxu0  ;;  %v202_v62 = vpop.f32.mrf.mxu1 }
  0x93   :  { %v241_v63 = vmax.f32 %v93_v61, %v202_v62 }
  0x96   :  { %v324_v0 = vpop.f32.mrf.mxu2  ;;  %v446_v1 = vpop.f32.mrf.mxu3 }
  0x97   :  { %v363_v2 = vmax.f32 %v241_v63, %v324_v0 }
  0x99   :  { %v485_v4 = vmax.f32 %v363_v2, %v446_v1 }
  0x9a   :  { %v96_v5 = vpop.f32.mrf.mxu0  ;;  %v205_v6 = vpop.f32.mrf.mxu1 }
  0x9b   :  { %v502_v7 = vadd.f32 %v896_v3, %v485_v4  ;;  %v242_v8 = vmax.f32 %v96_v5, %v205_v6 }
  0x9d   :  { %v515_v9 = vmax.f32 %v502_v7, 0.0 }
  0x9e   :  { %v327_v10 = vpop.f32.mrf.mxu2  ;;  %v449_v11 = vpop.f32.mrf.mxu3 }
  0x9f   :  { %529 = vst.msk [vmem:[%s966_s3] sm:$0xff] %vm528_vm1, %v515_v9  ;;  %v364_v12 = vmax.f32 %v242_v8, %v327_v10 }
  0xa1   :  { %v486_v13 = vmax.f32 %v364_v12, %v449_v11 }
  0xa2   :  { %v99_v14 = vpop.f32.mrf.mxu0  ;;  %v208_v15 = vpop.f32.mrf.mxu1 }
  0xa3   :  { %v503_v16 = vadd.f32 %v896_v3, %v486_v13  ;;  %v243_v17 = vmax.f32 %v99_v14, %v208_v15 }
  0xa5   :  { %v516_v18 = vmax.f32 %v503_v16, 0.0 }
  0xa6   :  { %v330_v19 = vpop.f32.mrf.mxu2  ;;  %v452_v20 = vpop.f32.mrf.mxu3 }
  0xa7   :  { %530 = vst.msk [vmem:[%s966_s3 + $0x8] sm:$0xff] %vm528_vm1, %v516_v18  ;;  %v365_v21 = vmax.f32 %v243_v17, %v330_v19 }
  0xa9   :  { %v487_v22 = vmax.f32 %v365_v21, %v452_v20 }
  0xaa   :  { %v102_v23 = vpop.f32.mrf.mxu0  ;;  %v211_v24 = vpop.f32.mrf.mxu1 }
  0xab   :  { %v504_v25 = vadd.f32 %v896_v3, %v487_v22  ;;  %v244_v26 = vmax.f32 %v102_v23, %v211_v24 }
  0xad   :  { %v517_v27 = vmax.f32 %v504_v25, 0.0 }
  0xae   :  { %v333_v28 = vpop.f32.mrf.mxu2  ;;  %v455_v29 = vpop.f32.mrf.mxu3 }
  0xaf   :  { %531 = vst.msk [vmem:[%s966_s3 + $0x10] sm:$0xff] %vm528_vm1, %v517_v27  ;;  %v366_v30 = vmax.f32 %v244_v26, %v333_v28 }
  0xb1   :  { %v488_v31 = vmax.f32 %v366_v30, %v455_v29 }
  0xb2   :  { %v105_v32 = vpop.f32.mrf.mxu0  ;;  %v214_v33 = vpop.f32.mrf.mxu1 }
  0xb3   :  { %v505_v34 = vadd.f32 %v896_v3, %v488_v31  ;;  %v245_v35 = vmax.f32 %v105_v32, %v214_v33 }
  0xb5   :  { %v518_v36 = vmax.f32 %v505_v34, 0.0 }
  0xb6   :  { %v336_v37 = vpop.f32.mrf.mxu2  ;;  %v458_v38 = vpop.f32.mrf.mxu3 }
  0xb7   :  { %532 = vst.msk [vmem:[%s966_s3 + $0x18] sm:$0xff] %vm528_vm1, %v518_v36  ;;  %v367_v39 = vmax.f32 %v245_v35, %v336_v37 }
  0xb9   :  { %v489_v40 = vmax.f32 %v367_v39, %v458_v38 }
  0xba   :  { %v108_v41 = vpop.f32.mrf.mxu0  ;;  %v217_v42 = vpop.f32.mrf.mxu1 }
  0xbb   :  { %v506_v43 = vadd.f32 %v896_v3, %v489_v40  ;;  %v246_v44 = vmax.f32 %v108_v41, %v217_v42 }
  0xbd   :  { %v519_v45 = vmax.f32 %v506_v43, 0.0 }
  0xbe   :  { %v339_v46 = vpop.f32.mrf.mxu2  ;;  %v461_v47 = vpop.f32.mrf.mxu3 }
  0xbf   :  { %533 = vst.msk [vmem:[%s966_s3 + $0x20] sm:$0xff] %vm528_vm1, %v519_v45  ;;  %v368_v48 = vmax.f32 %v246_v44, %v339_v46 }
  0xc1   :  { %v490_v49 = vmax.f32 %v368_v48, %v461_v47 }
  0xc2   :  { %v111_v50 = vpop.f32.mrf.mxu0  ;;  %v220_v51 = vpop.f32.mrf.mxu1 }
  0xc3   :  { %v507_v52 = vadd.f32 %v896_v3, %v490_v49  ;;  %v247_v53 = vmax.f32 %v111_v50, %v220_v51 }
  0xc5   :  { %v520_v54 = vmax.f32 %v507_v52, 0.0 }
  0xc6   :  { %v342_v55 = vpop.f32.mrf.mxu2  ;;  %v464_v56 = vpop.f32.mrf.mxu3 }
  0xc7   :  { %534 = vst.msk [vmem:[%s966_s3 + $0x28] sm:$0xff] %vm528_vm1, %v520_v54  ;;  %v369_v57 = vmax.f32 %v247_v53, %v342_v55 }
  0xc9   :  { %v491_v58 = vmax.f32 %v369_v57, %v464_v56 }
  0xca   :  { %v114_v59 = vpop.f32.mrf.mxu0  ;;  %v223_v60 = vpop.f32.mrf.mxu1 }
  0xcb   :  { %v508_v61 = vadd.f32 %v896_v3, %v491_v58  ;;  %v248_v62 = vmax.f32 %v114_v59, %v223_v60 }
  0xcd   :  { %v521_v63 = vmax.f32 %v508_v61, 0.0 }
  0xce   :  { %v345_v0 = vpop.f32.mrf.mxu2  ;;  %v467_v1 = vpop.f32.mrf.mxu3 }
  0xcf   :  { %535 = vst.msk [vmem:[%s966_s3 + $0x30] sm:$0xff] %vm528_vm1, %v521_v63  ;;  %v370_v2 = vmax.f32 %v248_v62, %v345_v0 }
  0xd1   :  { %v492_v4 = vmax.f32 %v370_v2, %v467_v1 }
  0xd2   :  { %v117_v5 = vpop.f32.mrf.mxu0  ;;  %v226_v6 = vpop.f32.mrf.mxu1 }
  0xd3   :  { %v509_v7 = vadd.f32 %v896_v3, %v492_v4  ;;  %v249_v8 = vmax.f32 %v117_v5, %v226_v6 }
  0xd5   :  { %v522_v9 = vmax.f32 %v509_v7, 0.0 }
  0xd6   :  { %v348_v10 = vpop.f32.mrf.mxu2  ;;  %v470_v11 = vpop.f32.mrf.mxu3 }
  0xd7   :  { %536 = vst.msk [vmem:[%s966_s3 + $0x38] sm:$0xff] %vm528_vm1, %v522_v9  ;;  %v371_v12 = vmax.f32 %v249_v8, %v348_v10 }
  0xd9   :  { %v493_v13 = vmax.f32 %v371_v12, %v470_v11 }
  0xda   :  { %v120_v14 = vpop.f32.mrf.mxu0  ;;  %v229_v15 = vpop.f32.mrf.mxu1 }
  0xdb   :  { %v510_v16 = vadd.f32 %v896_v3, %v493_v13  ;;  %v250_v17 = vmax.f32 %v120_v14, %v229_v15 }
  0xdd   :  { %v523_v18 = vmax.f32 %v510_v16, 0.0 }
  0xde   :  { %v351_v19 = vpop.f32.mrf.mxu2  ;;  %v473_v20 = vpop.f32.mrf.mxu3 }
  0xdf   :  { %537 = vst.msk [vmem:[%s966_s3 + $0x40] sm:$0xff] %vm528_vm1, %v523_v18  ;;  %v372_v21 = vmax.f32 %v250_v17, %v351_v19 }
  0xe1   :  { %v494_v22 = vmax.f32 %v372_v21, %v473_v20 }
  0xe2   :  { %v123_v23 = vpop.f32.mrf.mxu0  ;;  %v232_v24 = vpop.f32.mrf.mxu1 }
  0xe3   :  { %v511_v25 = vadd.f32 %v896_v3, %v494_v22  ;;  %v251_v26 = vmax.f32 %v123_v23, %v232_v24 }
  0xe5   :  { %v524_v27 = vmax.f32 %v511_v25, 0.0 }
  0xe6   :  { %v354_v28 = vpop.f32.mrf.mxu2  ;;  %v476_v29 = vpop.f32.mrf.mxu3 }
  0xe7   :  { %538 = vst.msk [vmem:[%s966_s3 + $0x48] sm:$0xff] %vm528_vm1, %v524_v27  ;;  %v373_v30 = vmax.f32 %v251_v26, %v354_v28 }
  0xe9   :  { %v495_v31 = vmax.f32 %v373_v30, %v476_v29 }
  0xea   :  { %v126_v32 = vpop.f32.mrf.mxu0  ;;  %v235_v33 = vpop.f32.mrf.mxu1 }
  0xeb   :  { %v512_v34 = vadd.f32 %v896_v3, %v495_v31  ;;  %v252_v35 = vmax.f32 %v126_v32, %v235_v33 }
  0xed   :  { %v525_v36 = vmax.f32 %v512_v34, 0.0 }
  0xee   :  { %v357_v37 = vpop.f32.mrf.mxu2  ;;  %v479_v38 = vpop.f32.mrf.mxu3 }
  0xef   :  { %539 = vst.msk [vmem:[%s966_s3 + $0x50] sm:$0xff] %vm528_vm1, %v525_v36  ;;  %v374_v39 = vmax.f32 %v252_v35, %v357_v37 }
  0xf1   :  { %v496_v40 = vmax.f32 %v374_v39, %v479_v38 }
  0xf2   :  { %v129_v41 = vpop.f32.mrf.mxu0  ;;  %v238_v42 = vpop.f32.mrf.mxu1 }
  0xf3   :  { %v513_v43 = vadd.f32 %v896_v3, %v496_v40  ;;  %v253_v44 = vmax.f32 %v129_v41, %v238_v42 }
  0xf5   :  { %v526_v45 = vmax.f32 %v513_v43, 0.0 }
  0xf6   :  { %v360_v46 = vpop.f32.mrf.mxu2  ;;  %v482_v47 = vpop.f32.mrf.mxu3 }
  0xf7   :  { %540 = vst.msk [vmem:[%s966_s3 + $0x58] sm:$0xff] %vm528_vm1, %v526_v45  ;;  %v375_v48 = vmax.f32 %v253_v44, %v360_v46 }
  0xf9   :  { %v497_v49 = vmax.f32 %v375_v48, %v482_v47 }
  0xfb   :  { %v514_v50 = vadd.f32 %v896_v3, %v497_v49 }
  0xfd   :  { %v527_v51 = vmax.f32 %v514_v50, 0.0 }
  0xff   :  { %541 = vst.msk [vmem:[%s966_s3 + $0x60] sm:$0xff] %vm528_vm1, %v527_v51 }

// kernel: cnn_forward.5
= control target key start
LH: loop header
LB: loop body
LE: loop exit
PB: predicated region body
PF: predicated region fallthrough
CT: control target
= control target key end

     0   :  { %vm123_vm0 = vcmask 130048   ;;  %s615_s1 = inlined_call_operand.vmem [shape: f32[784,128], index: 1, kind: input, shape index: {}]   ;;  %s616_s2 = inlined_call_operand.vmem [shape: f32[1,128], index: 2, kind: input, shape index: {}]   ;;  %s617_s0 = inlined_call_operand.vmem [shape: f32[8,784], index: 0, kind: input, shape index: {}]   ;;  %s618_s3 = inlined_call_operand.vmem [shape: f32[8,128], index: 3, kind: output, shape index: {}]  }
   0x1   :  { %v36_v0 = vld [vmem:[%s615_s1 + $0x78] sm:$0xff]  ;;  %v35_v1 = vld [vmem:[%s615_s1 + $0x70] sm:$0xff]  ;;  %v34_v4 = vld [vmem:[%s615_s1 + $0x68] sm:$0xff] }
   0x2   :  { %v52_v2 = vld [vmem:[%s615_s1 + $0xf8] sm:$0xff]  ;;  %127 = vmatpush.msra.mxu0 %v36_v0  ;;  %v51_v3 = vld [vmem:[%s615_s1 + $0xf0] sm:$0xff]  ;;  %v50_v5 = vld [vmem:[%s615_s1 + $0xe8] sm:$0xff] }
   0x3   :  { %147 = vmatpush.msra.mxu1 %v52_v2  ;;  %v33_v6 = vld [vmem:[%s615_s1 + $0x60] sm:$0xff]  ;;  %v32_v8 = vld [vmem:[%s615_s1 + $0x58] sm:$0xff]  ;;  %v31_v10 = vld [vmem:[%s615_s1 + $0x50] sm:$0xff] }
   0x4   :  { %128 = vmatpush.msra.mxu0 %v35_v1  ;;  %v49_v7 = vld [vmem:[%s615_s1 + $0xe0] sm:$0xff]  ;;  %v48_v9 = vld [vmem:[%s615_s1 + $0xd8] sm:$0xff]  ;;  %v47_v12 = vld [vmem:[%s615_s1 + $0xd0] sm:$0xff] }
   0x5   :  { %148 = vmatpush.msra.mxu1 %v51_v3  ;;  %v68_v11 = vld [vmem:[%s615_s1 + $0x178] sm:$0xff]  ;;  %v67_v13 = vld [vmem:[%s615_s1 + $0x170] sm:$0xff]  ;;  %v66_v15 = vld [vmem:[%s615_s1 + $0x168] sm:$0xff] }
   0x6   :  { %129 = vmatpush.msra.mxu0 %v34_v4  ;;  %167 = vmatpush.msra.mxu2 %v68_v11  ;;  %v84_v14 = vld [vmem:[%s615_s1 + $0x1f8] sm:$0xff]  ;;  %v83_v16 = vld [vmem:[%s615_s1 + $0x1f0] sm:$0xff]  ;;  %v30_v17 = vld [vmem:[%s615_s1 + $0x48] sm:$0xff] }
   0x7   :  { %149 = vmatpush.msra.mxu1 %v50_v5  ;;  %v46_v18 = vld [vmem:[%s615_s1 + $0xc8] sm:$0xff]  ;;  %187 = vmatpush.msra.mxu3 %v84_v14  ;;  %v65_v19 = vld [vmem:[%s615_s1 + $0x160] sm:$0xff]  ;;  %v64_v23 = vld [vmem:[%s615_s1 + $0x158] sm:$0xff] }
   0x8   :  { %130 = vmatpush.msra.mxu0 %v33_v6  ;;  %168 = vmatpush.msra.mxu2 %v67_v13  ;;  %v82_v20 = vld [vmem:[%s615_s1 + $0x1e8] sm:$0xff]  ;;  %v29_v21 = vld [vmem:[%s615_s1 + $0x40] sm:$0xff]  ;;  %v28_v25 = vld [vmem:[%s615_s1 + $0x38] sm:$0xff] }
   0x9   :  { %150 = vmatpush.msra.mxu1 %v49_v7  ;;  %v45_v22 = vld [vmem:[%s615_s1 + $0xc0] sm:$0xff]  ;;  %188 = vmatpush.msra.mxu3 %v83_v16  ;;  %v44_v26 = vld [vmem:[%s615_s1 + $0xb8] sm:$0xff]  ;;  %v63_v27 = vld [vmem:[%s615_s1 + $0x150] sm:$0xff] }
   0xa   :  { %131 = vmatpush.msra.mxu0 %v32_v8  ;;  %169 = vmatpush.msra.mxu2 %v66_v15  ;;  %v81_v24 = vld [vmem:[%s615_s1 + $0x1e0] sm:$0xff]  ;;  %v80_v28 = vld [vmem:[%s615_s1 + $0x1d8] sm:$0xff]  ;;  %v27_v29 = vld [vmem:[%s615_s1 + $0x30] sm:$0xff] }
   0xb   :  { %151 = vmatpush.msra.mxu1 %v48_v9  ;;  %189 = vmatpush.msra.mxu3 %v82_v20  ;;  %v43_v30 = vld [vmem:[%s615_s1 + $0xb0] sm:$0xff]  ;;  %v62_v31 = vld [vmem:[%s615_s1 + $0x148] sm:$0xff]  ;;  %v61_v35 = vld [vmem:[%s615_s1 + $0x140] sm:$0xff] }
   0xc   :  { %132 = vmatpush.msra.mxu0 %v31_v10  ;;  %170 = vmatpush.msra.mxu2 %v65_v19  ;;  %v79_v32 = vld [vmem:[%s615_s1 + $0x1d0] sm:$0xff]  ;;  %v26_v33 = vld [vmem:[%s615_s1 + $0x28] sm:$0xff]  ;;  %v25_v37 = vld [vmem:[%s615_s1 + $0x20] sm:$0xff] }
   0xd   :  { %152 = vmatpush.msra.mxu1 %v47_v12  ;;  %190 = vmatpush.msra.mxu3 %v81_v24  ;;  %v42_v34 = vld [vmem:[%s615_s1 + $0xa8] sm:$0xff]  ;;  %v41_v38 = vld [vmem:[%s615_s1 + $0xa0] sm:$0xff]  ;;  %v60_v39 = vld [vmem:[%s615_s1 + $0x138] sm:$0xff] }
   0xe   :  { %133 = vmatpush.msra.mxu0 %v30_v17  ;;  %171 = vmatpush.msra.mxu2 %v64_v23  ;;  %v78_v36 = vld [vmem:[%s615_s1 + $0x1c8] sm:$0xff]  ;;  %v77_v40 = vld [vmem:[%s615_s1 + $0x1c0] sm:$0xff]  ;;  %v24_v41 = vld [vmem:[%s615_s1 + $0x18] sm:$0xff] }
   0xf   :  { %153 = vmatpush.msra.mxu1 %v46_v18  ;;  %191 = vmatpush.msra.mxu3 %v80_v28  ;;  %v40_v42 = vld [vmem:[%s615_s1 + $0x98] sm:$0xff]  ;;  %v59_v43 = vld [vmem:[%s615_s1 + $0x130] sm:$0xff]  ;;  %v58_v47 = vld [vmem:[%s615_s1 + $0x128] sm:$0xff] }
  0x10   :  { %134 = vmatpush.msra.mxu0 %v29_v21  ;;  %172 = vmatpush.msra.mxu2 %v63_v27  ;;  %v76_v44 = vld [vmem:[%s615_s1 + $0x1b8] sm:$0xff]  ;;  %v23_v45 = vld [vmem:[%s615_s1 + $0x10] sm:$0xff]  ;;  %v22_v49 = vld [vmem:[%s615_s1 + $0x8] sm:$0xff] }
  0x11   :  { %154 = vmatpush.msra.mxu1 %v45_v22  ;;  %192 = vmatpush.msra.mxu3 %v79_v32  ;;  %v39_v46 = vld [vmem:[%s615_s1 + $0x90] sm:$0xff]  ;;  %v38_v50 = vld [vmem:[%s615_s1 + $0x88] sm:$0xff]  ;;  %v57_v51 = vld [vmem:[%s615_s1 + $0x120] sm:$0xff] }
  0x12   :  { %135 = vmatpush.msra.mxu0 %v28_v25  ;;  %173 = vmatpush.msra.mxu2 %v62_v31  ;;  %v75_v48 = vld [vmem:[%s615_s1 + $0x1b0] sm:$0xff]  ;;  %v74_v52 = vld [vmem:[%s615_s1 + $0x1a8] sm:$0xff]  ;;  %v21_v53 = vld [vmem:[%s615_s1] sm:$0xff] }
  0x13   :  { %155 = vmatpush.msra.mxu1 %v44_v26  ;;  %193 = vmatpush.msra.mxu3 %v78_v36  ;;  %v37_v54 = vld [vmem:[%s615_s1 + $0x80] sm:$0xff]  ;;  %v100_v55 = vld [vmem:[%s615_s1 + $0x278] sm:$0xff]  ;;  %v99_v59 = vld [vmem:[%s615_s1 + $0x270] sm:$0xff] }
  0x14   :  { %136 = vmatpush.msra.mxu0 %v27_v29  ;;  %174 = vmatpush.msra.mxu2 %v61_v35  ;;  %v116_v56 = vld [vmem:[%s615_s1 + $0x2f8] sm:$0xff]  ;;  %v73_v58 = vld [vmem:[%s615_s1 + $0x1a0] sm:$0xff]  ;;  %v115_v60 = vld [vmem:[%s615_s1 + $0x2f0] sm:$0xff] }
  0x15   :  { %156 = vmatpush.msra.mxu1 %v43_v30  ;;  %194 = vmatpush.msra.mxu3 %v77_v40  ;;  %v56_v57 = vld [vmem:[%s615_s1 + $0x118] sm:$0xff]  ;;  %v55_v61 = vld [vmem:[%s615_s1 + $0x110] sm:$0xff]  ;;  %v98_v63 = vld [vmem:[%s615_s1 + $0x268] sm:$0xff] }
  0x16   :  { %137 = vmatpush.msra.mxu0 %v26_v33  ;;  %175 = vmatpush.msra.mxu2 %v60_v39  ;;  %v72_v62 = vld [vmem:[%s615_s1 + $0x198] sm:$0xff]  ;;  %v114_v0 = vld [vmem:[%s615_s1 + $0x2e8] sm:$0xff]  ;;  %v71_v2 = vld [vmem:[%s615_s1 + $0x190] sm:$0xff] }
  0x17   :  { %157 = vmatpush.msra.mxu1 %v42_v34  ;;  %195 = vmatpush.msra.mxu3 %v76_v44  ;;  %v54_v1 = vld [vmem:[%s615_s1 + $0x108] sm:$0xff]  ;;  %v97_v3 = vld [vmem:[%s615_s1 + $0x260] sm:$0xff]  ;;  %v96_v7 = vld [vmem:[%s615_s1 + $0x258] sm:$0xff] }
  0x18   :  { %138 = vmatpush.msra.mxu0 %v25_v37  ;;  %176 = vmatpush.msra.mxu2 %v59_v43  ;;  %v113_v4 = vld [vmem:[%s615_s1 + $0x2e0] sm:$0xff]  ;;  %v70_v6 = vld [vmem:[%s615_s1 + $0x188] sm:$0xff]  ;;  %v112_v8 = vld [vmem:[%s615_s1 + $0x2d8] sm:$0xff] }
  0x19   :  { %158 = vmatpush.msra.mxu1 %v41_v38  ;;  %196 = vmatpush.msra.mxu3 %v75_v48  ;;  %v53_v5 = vld [vmem:[%s615_s1 + $0x100] sm:$0xff]  ;;  %v16_v9 = vld [vmem:[%s617_s0 + $0x10] sm:$0xff]  ;;  %v118_v13 = vld [vmem:[%s615_s1 + $0x308] sm:$0xff] }
  0x1a   :  { %139 = vmatpush.msra.mxu0 %v24_v41  ;;  %177 = vmatpush.msra.mxu2 %v58_v47  ;;  %v69_v10 = vld [vmem:[%s615_s1 + $0x180] sm:$0xff]  ;;  %v95_v11 = vld [vmem:[%s615_s1 + $0x250] sm:$0xff]  ;;  %v94_v15 = vld [vmem:[%s615_s1 + $0x248] sm:$0xff] }
  0x1b   :  { %159 = vmatpush.msra.mxu1 %v40_v42  ;;  %197 = vmatpush.msra.mxu3 %v74_v52  ;;  %v111_v12 = vld [vmem:[%s615_s1 + $0x2d0] sm:$0xff]  ;;  %v14_v14 = vld [vmem:[%s617_s0] sm:$0xff]  ;;  %v110_v16 = vld [vmem:[%s615_s1 + $0x2c8] sm:$0xff] }
  0x1c   :  { %140 = vmatpush.msra.mxu0 %v23_v45  ;;  %178 = vmatpush.msra.mxu2 %v57_v51  ;;  %v17_v17 = vld [vmem:[%s617_s0 + $0x18] sm:$0xff]  ;;  %v15_v18 = vld [vmem:[%s617_s0 + $0x8] sm:$0xff]  ;;  %v93_v19 = vld [vmem:[%s615_s1 + $0x240] sm:$0xff] }
  0x1d   :  { %160 = vmatpush.msra.mxu1 %v39_v46  ;;  %198 = vmatpush.msra.mxu3 %v73_v58  ;;  %v109_v20 = vld [vmem:[%s615_s1 + $0x2c0] sm:$0xff]  ;;  %v92_v22 = vld [vmem:[%s615_s1 + $0x238] sm:$0xff]  ;;  %v20_v24 = vld [vmem:[%s617_s0 + $0x30] sm:$0xff] }
  0x1e   :  { %141 = vmatpush.msra.mxu0 %v22_v49  ;;  %179 = vmatpush.msra.mxu2 %v56_v57  ;;  %v117_v21 = vld [vmem:[%s615_s1 + $0x300] sm:$0xff]  ;;  %v108_v23 = vld [vmem:[%s615_s1 + $0x2b8] sm:$0xff]  ;;  %v91_v25 = vld [vmem:[%s615_s1 + $0x230] sm:$0xff] }
  0x1f   :  { %161 = vmatpush.msra.mxu1 %v38_v50  ;;  %199 = vmatpush.msra.mxu3 %v72_v62  ;;  %v107_v26 = vld [vmem:[%s615_s1 + $0x2b0] sm:$0xff]  ;;  %v90_v27 = vld [vmem:[%s615_s1 + $0x228] sm:$0xff]  ;;  %v89_v29 = vld [vmem:[%s615_s1 + $0x220] sm:$0xff] }
  0x20   :  { %142 = vmatpush.msra.mxu0 %v21_v53  ;;  %180 = vmatpush.msra.mxu2 %v55_v61  ;;  %v106_v28 = vld [vmem:[%s615_s1 + $0x2a8] sm:$0xff]  ;;  %v105_v30 = vld [vmem:[%s615_s1 + $0x2a0] sm:$0xff]  ;;  %v88_v31 = vld [vmem:[%s615_s1 + $0x218] sm:$0xff] }
  0x21   :  { %162 = vmatpush.msra.mxu1 %v37_v54  ;;  %200 = vmatpush.msra.mxu3 %v71_v2  ;;  %v104_v32 = vld [vmem:[%s615_s1 + $0x298] sm:$0xff]  ;;  %v87_v33 = vld [vmem:[%s615_s1 + $0x210] sm:$0xff]  ;;  %v86_v35 = vld [vmem:[%s615_s1 + $0x208] sm:$0xff] }
  0x22   :  { %207 = vmatpush.msrb.mxu0 %v100_v55  ;;  %181 = vmatpush.msra.mxu2 %v54_v1  ;;  %v103_v34 = vld [vmem:[%s615_s1 + $0x290] sm:$0xff]  ;;  %v102_v36 = vld [vmem:[%s615_s1 + $0x288] sm:$0xff]  ;;  %v85_v37 = vld [vmem:[%s615_s1 + $0x200] sm:$0xff] }
  0x23   :  { %227 = vmatpush.msrb.mxu1 %v116_v56  ;;  %201 = vmatpush.msra.mxu3 %v70_v6  ;;  %v101_v38 = vld [vmem:[%s615_s1 + $0x280] sm:$0xff]  ;;  %v19_v40 = vld [vmem:[%s617_s0 + $0x28] sm:$0xff] }
  0x24   :  { %208 = vmatpush.msrb.mxu0 %v99_v59  ;;  %182 = vmatpush.msra.mxu2 %v53_v5  ;;  %v18_v39 = vld [vmem:[%s617_s0 + $0x20] sm:$0xff] }
  0x25   :  { %228 = vmatpush.msrb.mxu1 %v115_v60  ;;  %183 = vmatmul.f32.vlgmr.msra.gmra.mxu2 %v16_v9  ;;  %v273_v41 = vld [vmem:[%s616_s2] ss:$0 sm:$0xff] }
  0x26   :  { %209 = vmatpush.msrb.mxu0 %v98_v63  ;;  %202 = vmatpush.msra.mxu3 %v69_v10 }
  0x27   :  { %229 = vmatpush.msrb.mxu1 %v114_v0  ;;  %261 = vmatpush.msrb.mxu2 %v118_v13 }
  0x28   :  { %210 = vmatpush.msrb.mxu0 %v97_v3  ;;  %203 = vmatmul.f32.vlgmr.msra.gmra.mxu3 %v17_v17 }
  0x29   :  { %230 = vmatpush.msrb.mxu1 %v113_v4  ;;  %143 = vmatmul.f32.vlgmr.msra.gmra.mxu0 %v14_v14 }
  0x2a   :  { %211 = vmatpush.msrb.mxu0 %v96_v7  ;;  %163 = vmatmul.f32.vlgmr.msra.gmra.mxu1 %v15_v18 }
  0x2b   :  { %231 = vmatpush.msrb.mxu1 %v112_v8  ;;  %262 = vmatpush.msrb.mxu2 %v117_v21 }
  0x2c   :  { %212 = vmatpush.msrb.mxu0 %v95_v11 }
  0x2d   :  { %232 = vmatpush.msrb.mxu1 %v111_v12  ;;  %272 = vmatmul.msk.f32.vlgmr.msrb.gmra.mxu2 %vm123_vm0, %v20_v24 }
  0x2e   :  { %213 = vmatpush.msrb.mxu0 %v94_v15 }
  0x2f   :  { %233 = vmatpush.msrb.mxu1 %v110_v16 }
  0x30   :  { %214 = vmatpush.msrb.mxu0 %v93_v19 }
  0x31   :  { %234 = vmatpush.msrb.mxu1 %v109_v20 }
  0x32   :  { %215 = vmatpush.msrb.mxu0 %v92_v22 }
  0x33   :  { %235 = vmatpush.msrb.mxu1 %v108_v23 }
  0x34   :  { %216 = vmatpush.msrb.mxu0 %v91_v25 }
  0x35   :  { %236 = vmatpush.msrb.mxu1 %v107_v26 }
  0x36   :  { %217 = vmatpush.msrb.mxu0 %v90_v27 }
  0x37   :  { %237 = vmatpush.msrb.mxu1 %v106_v28 }
  0x38   :  { %218 = vmatpush.msrb.mxu0 %v89_v29 }
  0x39   :  { %238 = vmatpush.msrb.mxu1 %v105_v30 }
  0x3a   :  { %219 = vmatpush.msrb.mxu0 %v88_v31 }
  0x3b   :  { %239 = vmatpush.msrb.mxu1 %v104_v32 }
  0x3c   :  { %220 = vmatpush.msrb.mxu0 %v87_v33 }
  0x3d   :  { %240 = vmatpush.msrb.mxu1 %v103_v34 }
  0x3e   :  { %221 = vmatpush.msrb.mxu0 %v86_v35 }
  0x3f   :  { %241 = vmatpush.msrb.mxu1 %v102_v36 }
  0x40   :  { %222 = vmatpush.msrb.mxu0 %v85_v37 }
  0x41   :  { %242 = vmatpush.msrb.mxu1 %v101_v38  ;;  %223 = vmatmul.f32.vlgmr.msrb.gmra.mxu0 %v18_v39 }
  0x42   :  { %243 = vmatmul.f32.vlgmr.msrb.gmra.mxu1 %v19_v40 }
  0xa6   :  { %v144_v42 = vpop.f32.mrf.mxu0 }
  0xa7   :  { %v145_v43 = vadd.f32 %v273_v41, %v144_v42  ;;  %v164_v44 = vpop.f32.mrf.mxu1 }
  0xa8   :  { %v184_v46 = vpop.f32.mrf.mxu2 }
  0xa9   :  { %v165_v45 = vadd.f32 %v164_v44, %v145_v43 }
  0xab   :  { %v185_v47 = vadd.f32 %v184_v46, %v165_v45  ;;  %v204_v48 = vpop.f32.mrf.mxu3 }
  0xad   :  { %v205_v49 = vadd.f32 %v204_v48, %v185_v47 }
  0xb0   :  { %v264_v53 = vpop.f32.mrf.mxu2 }
  0xbe   :  { %v224_v50 = vpop.f32.mrf.mxu0 }
  0xbf   :  { %v244_v51 = vpop.f32.mrf.mxu1  ;;  %v225_v52 = vadd.f32 %v224_v50, %v205_v49 }
  0xc1   :  { %v245_v54 = vadd.f32 %v244_v51, %v225_v52 }
  0xc3   :  { %v265_v55 = vadd.f32 %v264_v53, %v245_v54 }
  0xc5   :  { %267 = vst [vmem:[%s618_s3] sm:$0xff] %v265_v55 }

</bundles_post_ra>
